<compile_context>
chip_gen: v7x
topology: tpu7x:2x2x1
jax: 0.10.0
libtpu: 0.0.40
codegen_flags: <defaults>
</compile_context>

<pallas_src>
import jax
import jax.numpy as jnp
from jax.experimental import pallas as pl
from jax.experimental.pallas import tpu as pltpu

_HI = jax.lax.Precision.HIGHEST


def _stdb_kernel(fea_ref, w1bd_ref, shift_ref, w2bd_ref, expand_ref, gsum_ref,
                 o_ref):
    f32 = jnp.float32
    fea = fea_ref[...].astype(f32)                              # (tm, k*c)

    # Linear1 (bias=False, BN scale pre-folded) with block-diagonal weights:
    # one MXU matmul producing a dense (tm, k*p) lane tile.
    h = jnp.dot(fea, w1bd_ref[...], precision=_HI, preferred_element_type=f32)

    # Folded-BN shift + ReLU (dense VPU work, f32 path -> also correct on v5e).
    h = jnp.maximum(h + shift_ref[...], 0.0)

    # Linear2 (p -> 1 per neighbor; bias dropped, cancels in softmax) as a
    # block-structured matmul -> per-neighbor scores (tm, k).
    s = jnp.dot(h, w2bd_ref[...], precision=_HI, preferred_element_type=f32)

    # Softmax over the k neighbors (lane reduce; EUP approximate reciprocal).
    s = s - jnp.max(s, axis=1, keepdims=True)
    e = jnp.exp(s)
    prob = e * pl.reciprocal(jnp.sum(e, axis=1, keepdims=True), approx=True)

    # Weighted sum over neighbors without any lane->sublane relayout of prob:
    # expand prob to (tm, k*c) via a 0/1 matmul, multiply, group-sum back to c.
    pe = jnp.dot(prob, expand_ref[...], precision=_HI, preferred_element_type=f32)
    weighted = fea * pe
    o_ref[...] = jnp.dot(weighted, gsum_ref[...], precision=_HI,
                         preferred_element_type=f32).astype(o_ref.dtype)


def _round_up(x, n):
    return -(-x // n) * n


def symmetric_transition_down(fea_knn, w1, bn_gamma, bn_beta, bn_mean, bn_var,
                              w2, b2, *, eps=1e-5, tm=2048):
    """Pallas forward of SymmetricTransitionDownBlock (stride != 1 branch).

    b2 is accepted for API parity but unused: softmax over k is invariant to a
    per-row constant shift, so the final Linear's bias is dead work.
    """
    del b2
    m, k, c = fea_knn.shape
    p = w1.shape[1]
    f32 = jnp.float32

    # ---- fold eval-mode BatchNorm into the preceding bias-free Linear ------
    scale = bn_gamma.astype(f32) / jnp.sqrt(bn_var.astype(f32) + eps)      # (p,)
    shift = bn_beta.astype(f32) - bn_mean.astype(f32) * scale              # (p,)
    w1_f = w1.astype(f32) * scale[None, :]                                 # (c, p)

    # ---- lane-dense block-diagonal / block-structured operands -------------
    eye_k = jnp.eye(k, dtype=f32)
    w1_bd = jnp.kron(eye_k, w1_f)                                  # (k*c, k*p)
    w2_bd = jnp.kron(eye_k, w2.reshape(p, 1).astype(f32))          # (k*p, k)
    expand = jnp.kron(eye_k, jnp.ones((1, c), f32))                # (k,   k*c)
    gsum = jnp.kron(jnp.ones((k, 1), f32), jnp.eye(c, dtype=f32))  # (k*c, c)
    shift_t = jnp.tile(shift.reshape(1, p), (1, k))                # (1,   k*p)

    # Free view of the contiguous (m, k, c) array as (m, k*c): no HBM copy.
    fea_flat = fea_knn.reshape(m, k * c)

    # ---- row tiling: no padding, ragged last block --------------------------
    if m <= 8:
        tm_eff = m                                   # one full-extent block
    elif m <= tm:
        # Split into >= 2 blocks so both v7x TensorCores get work.
        tm_eff = max(8, _round_up(-(-m // 2), 8))
    else:
        tm_eff = tm
    grid = (pl.cdiv(m, tm_eff),)

    return pl.pallas_call(
        _stdb_kernel,
        out_shape=jax.ShapeDtypeStruct((m, c), fea_knn.dtype),
        grid_spec=pltpu.PrefetchScalarGridSpec(
            num_scalar_prefetch=0,
            grid=grid,
            in_specs=[
                pl.BlockSpec((tm_eff, k * c), lambda i: (i, 0)),  # fea tile
                pl.BlockSpec((k * c, k * p), lambda i: (0, 0)),   # W1 block-diag
                pl.BlockSpec((1, k * p), lambda i: (0, 0)),       # BN shift (tiled)
                pl.BlockSpec((k * p, k), lambda i: (0, 0)),       # W2 block-struct
                pl.BlockSpec((k, k * c), lambda i: (0, 0)),       # prob expand (0/1)
                pl.BlockSpec((k * c, c), lambda i: (0, 0)),       # group-sum (0/1)
            ],
            out_specs=pl.BlockSpec((tm_eff, c), lambda i: (i, 0)),
        ),
        compiler_params=pltpu.CompilerParams(
            dimension_semantics=("parallel",),
            vmem_limit_bytes=32 * 1024 * 1024,   # above v5e's 16 MiB default,
        ),                                        # well under v7x's 64 MiB
    )(fea_flat, w1_bd, shift_t, w2_bd, expand, gsum)


def ref_forward(fea_knn, w1, gamma, beta, mean, var, w2, b2, eps=1e-5):
    m, k, c = fea_knn.shape
    x = fea_knn.reshape(m * k, c).astype(jnp.float32)
    h = x @ w1
    h = (h - mean) / jnp.sqrt(var + eps) * gamma + beta
    h = jnp.maximum(h, 0.0)
    s = (h @ w2 + b2).reshape(m, k, 1)
    prob = jax.nn.softmax(s, axis=1)
    return jnp.sum(fea_knn.astype(jnp.float32) * prob, axis=1)


if __name__ == "__main__":
    # Small shapes consistent with the module: in_planes=16 -> c = 3 + 16 = 19,
    # k = 8 neighbors, m = 100 points (not a tile multiple, so the ragged
    # last-block path is exercised).
    in_planes = 16
    c = 3 + in_planes
    m, k = 100, 8

    key = jax.random.PRNGKey(0)
    kx, kw1, kw2, kb2, kg, kb, kmu, kvar = jax.random.split(key, 8)

    fea_knn = jax.random.normal(kx, (m, k, c), dtype=jnp.float32)

    # channel_shrinker parameters (deterministic, synthetic):
    w1 = jax.random.normal(kw1, (c, in_planes), dtype=jnp.float32) * 0.1
    bn_gamma = 1.0 + 0.1 * jax.random.normal(kg, (in_planes,), dtype=jnp.float32)
    bn_beta = 0.1 * jax.random.normal(kb, (in_planes,), dtype=jnp.float32)
    bn_mean = 0.05 * jax.random.normal(kmu, (in_planes,), dtype=jnp.float32)
    bn_var = 1.0 + 0.1 * jax.random.uniform(kvar, (in_planes,), dtype=jnp.float32)
    w2 = jax.random.normal(kw2, (in_planes, 1), dtype=jnp.float32) * 0.1
    b2 = 0.1 * jax.random.normal(kb2, (1,), dtype=jnp.float32)

    out = symmetric_transition_down(fea_knn, w1, bn_gamma, bn_beta, bn_mean,
                                    bn_var, w2, b2)
    out = jax.block_until_ready(out)

    expected = ref_forward(fea_knn, w1, bn_gamma, bn_beta, bn_mean, bn_var,
                           w2, b2)
    assert out.shape == (m, c)
    # Matmuls run at Precision.HIGHEST; the only approximation left is the EUP
    # approximate reciprocal in the softmax denominator.
    max_err = float(jnp.max(jnp.abs(out - expected)))
    assert jnp.allclose(out, expected, atol=2e-3, rtol=2e-3), max_err

    print("KERNEL_OK")
</pallas_src>

<mosaic_0001>
module attributes {stable_mosaic.version = 11 : i64} {
  func.func @_stdb_kernel(%arg0: i32, %arg1: memref<56x152xf32, #tpu.memory_space<vmem>>, %arg2: memref<152x128xf32, #tpu.memory_space<vmem>>, %arg3: memref<1x128xf32, #tpu.memory_space<vmem>>, %arg4: memref<128x8xf32, #tpu.memory_space<vmem>>, %arg5: memref<8x152xf32, #tpu.memory_space<vmem>>, %arg6: memref<152x19xf32, #tpu.memory_space<vmem>>, %arg7: memref<56x19xf32, #tpu.memory_space<vmem>>) attributes {dimension_semantics = [#tpu.dimension_semantics<parallel>], iteration_bounds = array<i64: 2>, scalar_prefetch = 0 : i64, scratch_operands = 0 : i64, tpu.core_type = #tpu.core_type<tc>, window_params = [{transform_indices = @transform_0, window_bounds = array<i64: 56, 152>}, {pipeline_mode = #tpu.pipeline_mode<synchronous>, transform_indices = @transform_1, window_bounds = array<i64: 152, 128>}, {pipeline_mode = #tpu.pipeline_mode<synchronous>, transform_indices = @transform_2, window_bounds = array<i64: 1, 128>}, {pipeline_mode = #tpu.pipeline_mode<synchronous>, transform_indices = @transform_3, window_bounds = array<i64: 128, 8>}, {pipeline_mode = #tpu.pipeline_mode<synchronous>, transform_indices = @transform_4, window_bounds = array<i64: 8, 152>}, {pipeline_mode = #tpu.pipeline_mode<synchronous>, transform_indices = @transform_5, window_bounds = array<i64: 152, 19>}, {transform_indices = @transform_6, window_bounds = array<i64: 56, 19>}]} {
    %c0 = arith.constant 0 : index
    %c0_0 = arith.constant 0 : index
    %0 = vector.load %arg1[%c0, %c0_0] : memref<56x152xf32, #tpu.memory_space<vmem>>, vector<56x152xf32>
    %c0_1 = arith.constant 0 : index
    %c0_2 = arith.constant 0 : index
    %1 = vector.load %arg2[%c0_1, %c0_2] : memref<152x128xf32, #tpu.memory_space<vmem>>, vector<152x128xf32>
    %cst = arith.constant dense<0.000000e+00> : vector<56x128xf32>
    %2 = tpu.matmul %0, %1, %cst {dimension_numbers = #tpu.dot_dimension_numbers<[1], [0], [0], [1], [0, 0, 1, 1], [], []>, precision = #tpu.contract_precision<fp32>} : vector<56x152xf32>, vector<152x128xf32>, vector<56x128xf32> -> vector<56x128xf32>
    %c0_3 = arith.constant 0 : index
    %c0_4 = arith.constant 0 : index
    %3 = vector.load %arg3[%c0_3, %c0_4] : memref<1x128xf32, #tpu.memory_space<vmem>>, vector<1x128xf32>
    %4 = vector.broadcast %3 : vector<1x128xf32> to vector<56x128xf32>
    %5 = arith.addf %2, %4 : vector<56x128xf32>
    %cst_5 = arith.constant 0.000000e+00 : f32
    %6 = vector.broadcast %cst_5 : f32 to vector<56x128xf32>
    %7 = arith.maximumf %5, %6 : vector<56x128xf32>
    %c0_6 = arith.constant 0 : index
    %c0_7 = arith.constant 0 : index
    %8 = vector.load %arg4[%c0_6, %c0_7] : memref<128x8xf32, #tpu.memory_space<vmem>>, vector<128x8xf32>
    %cst_8 = arith.constant dense<0.000000e+00> : vector<56x8xf32>
    %9 = tpu.matmul %7, %8, %cst_8 {dimension_numbers = #tpu.dot_dimension_numbers<[1], [0], [0], [1], [0, 0, 1, 1], [], []>, precision = #tpu.contract_precision<fp32>} : vector<56x128xf32>, vector<128x8xf32>, vector<56x8xf32> -> vector<56x8xf32>
    %cst_9 = arith.constant dense<0xFF800000> : vector<56xf32>
    %10 = vector.multi_reduction <maximumf>, %9, %cst_9 [1] : vector<56x8xf32> to vector<56xf32>
    %11 = vector.shape_cast %10 : vector<56xf32> to vector<56x1xf32>
    %12 = vector.broadcast %11 : vector<56x1xf32> to vector<56x8xf32>
    %13 = arith.subf %9, %12 : vector<56x8xf32>
    %14 = math.exp %13 : vector<56x8xf32>
    %cst_10 = arith.constant dense<0.000000e+00> : vector<56xf32>
    %15 = vector.multi_reduction <add>, %14, %cst_10 [1] : vector<56x8xf32> to vector<56xf32>
    %16 = vector.shape_cast %15 : vector<56xf32> to vector<56x1xf32>
    %17 = tpu.reciprocal %16 {approx = true} : vector<56x1xf32> -> vector<56x1xf32>
    %18 = vector.broadcast %17 : vector<56x1xf32> to vector<56x8xf32>
    %19 = arith.mulf %14, %18 : vector<56x8xf32>
    %c0_11 = arith.constant 0 : index
    %c0_12 = arith.constant 0 : index
    %20 = vector.load %arg5[%c0_11, %c0_12] : memref<8x152xf32, #tpu.memory_space<vmem>>, vector<8x152xf32>
    %cst_13 = arith.constant dense<0.000000e+00> : vector<56x152xf32>
    %21 = tpu.matmul %19, %20, %cst_13 {dimension_numbers = #tpu.dot_dimension_numbers<[1], [0], [0], [1], [0, 0, 1, 1], [], []>, precision = #tpu.contract_precision<fp32>} : vector<56x8xf32>, vector<8x152xf32>, vector<56x152xf32> -> vector<56x152xf32>
    %22 = arith.mulf %0, %21 : vector<56x152xf32>
    %c0_14 = arith.constant 0 : index
    %c0_15 = arith.constant 0 : index
    %23 = vector.load %arg6[%c0_14, %c0_15] : memref<152x19xf32, #tpu.memory_space<vmem>>, vector<152x19xf32>
    %cst_16 = arith.constant dense<0.000000e+00> : vector<56x19xf32>
    %24 = tpu.matmul %22, %23, %cst_16 {dimension_numbers = #tpu.dot_dimension_numbers<[1], [0], [0], [1], [0, 0, 1, 1], [], []>, precision = #tpu.contract_precision<fp32>} : vector<56x152xf32>, vector<152x19xf32>, vector<56x19xf32> -> vector<56x19xf32>
    %c0_17 = arith.constant 0 : index
    %c0_18 = arith.constant 0 : index
    %25 = vector.load %arg7[%c0_17, %c0_18] : memref<56x19xf32, #tpu.memory_space<vmem>>, vector<56x19xf32>
    tpu.vector_store %arg7[%c0_17, %c0_18], %24 {strides = array<i32>} : memref<56x19xf32, #tpu.memory_space<vmem>>, vector<56x19xf32>,
    return
  }
  func.func @transform_0(%arg0: i32) -> (i32, i32) {
    %c0_i32 = arith.constant 0 : i32
    %c0_i32_0 = arith.constant 0 : i32
    return %arg0, %c0_i32 : i32, i32
  }
  func.func @transform_1(%arg0: i32) -> (i32, i32) {
    %c0_i32 = arith.constant 0 : i32
    %c0_i32_0 = arith.constant 0 : i32
    %c0_i32_1 = arith.constant 0 : i32
    return %c0_i32, %c0_i32_0 : i32, i32
  }
  func.func @transform_2(%arg0: i32) -> (i32, i32) {
    %c0_i32 = arith.constant 0 : i32
    %c0_i32_0 = arith.constant 0 : i32
    %c0_i32_1 = arith.constant 0 : i32
    return %c0_i32, %c0_i32_0 : i32, i32
  }
  func.func @transform_3(%arg0: i32) -> (i32, i32) {
    %c0_i32 = arith.constant 0 : i32
    %c0_i32_0 = arith.constant 0 : i32
    %c0_i32_1 = arith.constant 0 : i32
    return %c0_i32, %c0_i32_0 : i32, i32
  }
  func.func @transform_4(%arg0: i32) -> (i32, i32) {
    %c0_i32 = arith.constant 0 : i32
    %c0_i32_0 = arith.constant 0 : i32
    %c0_i32_1 = arith.constant 0 : i32
    return %c0_i32, %c0_i32_0 : i32, i32
  }
  func.func @transform_5(%arg0: i32) -> (i32, i32) {
    %c0_i32 = arith.constant 0 : i32
    %c0_i32_0 = arith.constant 0 : i32
    %c0_i32_1 = arith.constant 0 : i32
    return %c0_i32, %c0_i32_0 : i32, i32
  }
  func.func @transform_6(%arg0: i32) -> (i32, i32) {
    %c0_i32 = arith.constant 0 : i32
    %c0_i32_0 = arith.constant 0 : i32
    return %arg0, %c0_i32 : i32, i32
  }
}

</mosaic_0001>

<bundles_post_ra>
// kernel: tpu_custom_call.1
= control target key start
LH: loop header
LB: loop body
LE: loop exit
PB: predicated region body
PF: predicated region fallthrough
CT: control target
= control target key end

     0   :  { %s5995_s21 = smov 0   ;;  %s5997_s22 = smov 0   ;;  %s8302_s0 = inlined_call_operand.vmem [shape: f32[100,152], index: 0, kind: input, shape index: {}]   ;;  %s8303_s1 = inlined_call_operand.vmem [shape: f32[152,128], index: 1, kind: input, shape index: {}]   ;;  %s8304_s2 = inlined_call_operand.vmem [shape: f32[1,128], index: 2, kind: input, shape index: {}]   ;;  %s8305_s3 = inlined_call_operand.vmem [shape: f32[128,8], index: 3, kind: input, shape index: {}]   ;;  %s8306_s4 = inlined_call_operand.vmem [shape: f32[8,152], index: 4, kind: input, shape index: {}]   ;;  %s8307_s5 = inlined_call_operand.vmem [shape: f32[152,19], index: 5, kind: input, shape index: {}]   ;;  %s8308_s6 = inlined_call_operand.vmem [shape: f32[100,19], index: 6, kind: output, shape index: {}]  }
   0x1   :  { %s5999_s23 = smov 0  }
   0x2 LB: > { %s6008_s24 = sadd.s32 4294967295, %s5923_s23   ;;  %s6010_s25 = sadd.s32 1, %s5923_s23   ;;  %s5923_s23 = sphi %s5999_s23, %s8611_s23   ;;  %s5919_s22 = sphi %s5997_s22, %s8610_s22   ;;  %s5915_s21 = sphi %s5995_s21, %s8609_s21  }
   0x3   : > { %s151_s26 = ssub.s32 %s5923_s23, %s6010_s25  ;;  %s154_s27 = sadd.s32 1, %s5919_s22 }
   0x4   : > { %p152_p0 = scmp.eq.s32.totalorder %s151_s26, 0  ;;  %p164_p1 = scmp.ne.s32.totalorder %s5919_s22, %s5915_s21 }
   0x5   : > { %p165_p2 = scmp.eq.s32.totalorder %s6008_s24, 1  ;;  %p4489_p3 = scmp.ge.s32.totalorder %s5923_s23, 1 }
   0x6   : > { %s6018_s28 = scalar_select %p152_p0, %s5919_s22, %s154_s27  }
   0x7   : > { %p6020_p4 = por %p165_p2, %p164_p1  ;;  %p224_p5 = scmp.lt.s32.totalorder %s5923_s23, 3 }
   0x9   : > { %p225_p6 = pnand %p4489_p3, %p224_p5 }
   0xb   : > { %228 = sbr.rel (%p225_p6) target bundleno = 1995 (0x7cb), region = 44 }
  0x12   : > { %v6027_v0 = vld [vmem:[%s8303_s1] sm:$0xff]  ;;  %v6032_v1 = vld [vmem:[%s8303_s1 + $0x8] sm:$0xff]  ;;  %v6037_v2 = vld [vmem:[%s8303_s1 + $0x10] sm:$0xff]  ;;  %v8339_v3 = vmov 0.0|0.0   ;;  %s6089_s26 = smul.u32 7, %s6008_s24  ;;  %vm321_vm0 = vcmask 195584  }
  0x13   : > { %4990 = vmatprep.subr.bf16.mxu0 %v8339_v3  ;;  %v344_v4 = vand.u32 4294901760, %v6027_v0  ;;  %v347_v5 = vand.u32 4294901760, %v6032_v1  ;;  %v6045_v6 = vld [vmem:[%s8303_s1 + $0x18] sm:$0xff]  ;;  %v350_v7 = vand.u32 4294901760, %v6037_v2  ;;  %v6051_v8 = vld [vmem:[%s8303_s1 + $0x20] sm:$0xff]  ;;  %v6056_v9 = vld [vmem:[%s8303_s1 + $0x28] sm:$0xff]  ;;  %4963 = vmatprep.subr.bf16.mxu1 %v8339_v3 }
  0x14   : > { %v353_v10 = vand.u32 4294901760, %v6045_v6  ;;  %v8318_v11 = vand.u32 4294901760, %v6051_v8  ;;  %v8317_v12 = vand.u32 4294901760, %v6056_v9  ;;  %v6065_v13 = vld [vmem:[%s8303_s1 + $0x30] sm:$0xff]  ;;  %v6070_v14 = vld [vmem:[%s8303_s1 + $0x38] sm:$0xff]  ;;  %p265_p7 = scmp.lt.s32.totalorder %s6089_s26, 12 }
  0x15   : > { %v6075_v15 = vsub.f32 %v6027_v0, %v344_v4  ;;  %v6080_v16 = vsub.f32 %v6032_v1, %v347_v5  ;;  %v6085_v17 = vsub.f32 %v6037_v2, %v350_v7  ;;  %v8316_v18 = vand.u32 4294901760, %v6065_v13  ;;  %v6147_v39 = vld [vmem:[%s8303_s1 + $0x40] sm:$0xff]  ;;  %v6152_v40 = vld [vmem:[%s8303_s1 + $0x48] sm:$0xff]  ;;  %v6157_v44 = vld [vmem:[%s8303_s1 + $0x50] sm:$0xff]  ;;  %s4506_s13 = smul.u32 (%p6020_p4), 56, %s6008_s24 }
  0x16   : > { %v6094_v19 = vsub.f32 %v6045_v6, %v353_v10  ;;  %v6099_v20 = vsub.f32 %v6051_v8, %v8318_v11  ;;  %v6104_v21 = vsub.f32 %v6056_v9, %v8317_v12  ;;  %v8315_v22 = vand.u32 4294901760, %v6070_v14  ;;  %v6165_v47 = vld [vmem:[%s8303_s1 + $0x58] sm:$0xff]  ;;  %v6170_v48 = vld [vmem:[%s8303_s1 + $0x60] sm:$0xff]  ;;  %v6177_v53 = vld [vmem:[%s8303_s1 + $0x68] sm:$0xff]  ;;  %s6187_s19 = scalar_select %p265_p7, %s6089_s26, 12 }
  0x17   : > { %v535_v23 = vand.u32 4294901760, %v6075_v15  ;;  %v8335_v24 = vand.u32 4294901760, %v6080_v16  ;;  %v8334_v25 = vand.u32 4294901760, %v6085_v17  ;;  %v6113_v26 = vsub.f32 %v6065_v13, %v8316_v18  ;;  %v6182_v54 = vld [vmem:[%s8303_s1 + $0x70] sm:$0xff]  ;;  %v6208_v63 = vld [vmem:[%s8303_s1 + $0x78] sm:$0xff]  ;;  %s8253_s16 = scalar_lea.vmem (%p6020_p4), %s8308_s6, %s4506_s13  }
  0x18   : > { %v8333_v27 = vand.u32 4294901760, %v6094_v19  ;;  %v8332_v28 = vand.u32 4294901760, %v6099_v20  ;;  %v8331_v29 = vand.u32 4294901760, %v6104_v21  ;;  %v6121_v30 = vsub.f32 %v6070_v14, %v8315_v22  ;;  %s4505_s27 = sshll.u32 %s6187_s19, 4 }
  0x19   : > { %v536_v31 = vsub.f32 %v6075_v15, %v535_v23  ;;  %v543_v32 = vsub.f32 %v6080_v16, %v8335_v24  ;;  %v550_v33 = vsub.f32 %v6085_v17, %v8334_v25  ;;  %v8330_v34 = vand.u32 4294901760, %v6113_v26  ;;  %s6254_s10 = scalar_lea.vmem %s8302_s0, %s4505_s27 }
  0x1a   : > { %v557_v35 = vsub.f32 %v6094_v19, %v8333_v27  ;;  %v564_v36 = vsub.f32 %v6099_v20, %v8332_v28  ;;  %v571_v37 = vsub.f32 %v6104_v21, %v8331_v29  ;;  %v8325_v38 = vand.u32 4294901760, %v6121_v30 }
  0x1b   : > { %v537_v41 = vand.u32 4294901760, %v536_v31  ;;  %v544_v42 = vand.u32 4294901760, %v543_v32  ;;  %v551_v43 = vand.u32 4294901760, %v550_v33  ;;  %v578_v46 = vsub.f32 %v6113_v26, %v8330_v34 }
  0x1c   : > { %v558_v45 = vand.u32 4294901760, %v557_v35  ;;  %v565_v50 = vand.u32 4294901760, %v564_v36  ;;  %v8314_v51 = vand.u32 4294901760, %v6147_v39  ;;  %v8313_v52 = vand.u32 4294901760, %v6152_v40 }
  0x1d   : > { %v4991_v49 = vpack.c.bf16 %v544_v42, %v537_v41  ;;  %v572_v56 = vand.u32 4294901760, %v571_v37  ;;  %v585_v57 = vsub.f32 %v6121_v30, %v8325_v38  ;;  %v8309_v58 = vand.u32 4294901760, %v6157_v44 }
  0x1e   : > { %v4994_v55 = vpack.c.bf16 %v558_v45, %v551_v43  ;;  %v6196_v59 = vsub.f32 %v6147_v39, %v8314_v51  ;;  %v6201_v60 = vsub.f32 %v6152_v40, %v8313_v52  ;;  %v8310_v61 = vand.u32 4294901760, %v6165_v47  ;;  %v6268_v52 = vld [vmem:[%s8303_s1 + $0x88] sm:$0xff] }
  0x1f   : > { %4992 = vmatpush1.bf16.msra.mxu0 %v4991_v49  ;;  %v8311_v62 = vand.u32 4294901760, %v6170_v48  ;;  %v579_v31 = vand.u32 4294901760, %v578_v46  ;;  %v6214_v32 = vsub.f32 %v6157_v44, %v8309_v58  ;;  %v8312_v33 = vand.u32 4294901760, %v6177_v53 }
  0x20   : > { %4993 = vmatprep.subr.bf16.mxu0 %v8339_v3  ;;  %v8319_v35 = vand.u32 4294901760, %v6182_v54  ;;  %v8322_v36 = vand.u32 4294901760, %v6196_v59  ;;  %v8321_v37 = vand.u32 4294901760, %v6201_v60  ;;  %v6223_v41 = vsub.f32 %v6165_v47, %v8310_v61 }
  0x21   : > { %v6228_v42 = vsub.f32 %v6170_v48, %v8311_v62  ;;  %v4997_v43 = vpack.c.bf16 %v572_v56, %v565_v50  ;;  %v8320_v45 = vand.u32 4294901760, %v6214_v32  ;;  %v6235_v46 = vsub.f32 %v6177_v53, %v8312_v33  ;;  %v6249_v56 = vld [vmem:[%s8303_s1 + $0x80] sm:$0xff] }
  0x22   : > { %v8323_v49 = vand.u32 4294901760, %v6208_v63  ;;  %v586_v58 = vand.u32 4294901760, %v585_v57  ;;  %v592_v61 = vsub.f32 %v6196_v59, %v8322_v36  ;;  %v599_v62 = vsub.f32 %v6201_v60, %v8321_v37  ;;  %v282_v37 = vld [vmem:[%s6254_s10 + $0x8] sm:$0xff] }
  0x23   : > { %4995 = vmatpush1.bf16.msra.mxu0 %v4994_v55  ;;  %v8324_v50 = vand.u32 4294901760, %v6223_v41  ;;  %v606_v55 = vsub.f32 %v6214_v32, %v8320_v45  ;;  %v8329_v57 = vand.u32 4294901760, %v6228_v42  ;;  %v6263_v33 = vsub.f32 %v6182_v54, %v8319_v35 }
  0x24   : > { %4996 = vmatprep.subr.bf16.mxu0 %v8339_v3  ;;  %v593_v51 = vand.u32 4294901760, %v592_v61  ;;  %v600_v22 = vand.u32 4294901760, %v599_v62  ;;  %v8326_v18 = vand.u32 4294901760, %v6235_v46  ;;  %v6274_v12 = vsub.f32 %v6208_v63, %v8323_v49 }
  0x25   : > { %v5000_v11 = vpack.c.bf16 %v586_v58, %v579_v31  ;;  %v613_v35 = vsub.f32 %v6223_v41, %v8324_v50  ;;  %v8327_v45 = vand.u32 4294901760, %v6249_v56  ;;  %v8328_v61 = vand.u32 4294901760, %v6268_v52 }
  0x26   : > { %v607_v62 = vand.u32 4294901760, %v606_v55  ;;  %v620_v36 = vsub.f32 %v6228_v42, %v8329_v57  ;;  %v633_v49 = vand.u32 4294901760, %v6263_v33  ;;  %v5003_v58 = vpack.c.bf16 %v600_v22, %v593_v51  ;;  %v313_v51 = vld [vmem:[%s8303_s1 + $0x90] sm:$0xff] }
  0x27   : > { %4998 = vmatpush1.bf16.msra.mxu0 %v4997_v43  ;;  %v627_v31 = vsub.f32 %v6235_v46, %v8326_v18  ;;  %v640_v43 = vand.u32 4294901760, %v6274_v12  ;;  %v6292_v50 = vsel %vm321_vm0, %v282_v37, 0  ;;  %v614_v38 = vand.u32 4294901760, %v613_v35 }
  0x28   : > { %4999 = vmatprep.subr.bf16.mxu0 %v8339_v3  ;;  %v6297_v55 = vsub.f32 %v6249_v56, %v8327_v45  ;;  %v6302_v22 = vsub.f32 %v6268_v52, %v8328_v61  ;;  %v6308_v18 = vand.u32 4294901760, %v6292_v50  ;;  %v634_v37 = vsub.f32 %v6263_v33, %v633_v49 }
  0x29   : > { %v628_v35 = vand.u32 4294901760, %v627_v31  ;;  %v6313_v45 = vand.u32 4294901760, %v313_v51  ;;  %v5006_v61 = vpack.c.bf16 %v614_v38, %v607_v62  ;;  %v641_v57 = vsub.f32 %v6274_v12, %v640_v43 }
  0x2a   : > { %692 = vmatprep.mubr.f32.mxu0 %v6308_v18  ;;  %v647_v34 = vand.u32 4294901760, %v6297_v55  ;;  %v654_v29 = vand.u32 4294901760, %v6302_v22  ;;  %v635_v28 = vand.u32 4294901760, %v634_v37  ;;  %v6343_v0 = vpack.c.bf16 %v353_v10, %v350_v7 }
  0x2b   : > { %5001 = vmatpush1.bf16.msra.mxu0 %v5000_v11  ;;  %v621_v11 = vand.u32 4294901760, %v620_v36  ;;  %v6320_v27 = vsub.f32 %v313_v51, %v6313_v45  ;;  %v642_v31 = vand.u32 4294901760, %v641_v57  ;;  %v8447_v1 = vand.u32 4294901760, %v6080_v16 }
  0x2c   : > { %5002 = vmatprep.subr.bf16.mxu0 %v8339_v3  ;;  %v648_v25 = vsub.f32 %v6297_v55, %v647_v34  ;;  %v655_v38 = vsub.f32 %v6302_v22, %v654_v29  ;;  %v8449_v51 = vand.u32 4294901760, %v6094_v19  ;;  %v8450_v2 = vand.u32 4294901760, %v6099_v20 }
  0x2d   : > { %v5009_v36 = vpack.c.bf16 %v628_v35, %v621_v11  ;;  %v8336_v62 = vand.u32 4294901760, %v6320_v27  ;;  %v8451_v6 = vand.u32 4294901760, %v6104_v21  ;;  %v8452_v10 = vand.u32 4294901760, %v6113_v26  ;;  %v6371_v35 = vld [vmem:[%s6254_s10] sm:$0xff] }
  0x2e   : > { %v649_v24 = vand.u32 4294901760, %v648_v25  ;;  %v656_v37 = vand.u32 4294901760, %v655_v38  ;;  %vm5959_vm1 = vmmov 0   ;;  %vm2294_vm2 = vcmask 64512  }
  0x2f   : > { %5004 = vmatpush1.bf16.msra.mxu0 %v5003_v58  ;;  %v5012_v58 = vpack.c.bf16 %v642_v31, %v635_v28  ;;  %v662_v57 = vsub.f32 %v6320_v27, %v8336_v62  ;;  %v284_v28 = vld [vmem:[%s6254_s10 + $0x18] sm:$0xff]  ;;  %v6362_v7 = vpack.c.bf16 %v8451_v6, %v8450_v2  ;;  %v8455_v31 = vand.u32 4294901760, %v6201_v60 }
  0x30   : > { %5005 = vmatprep.subr.bf16.mxu0 %v8339_v3  ;;  %v5015_v25 = vpack.c.bf16 %v656_v37, %v649_v24  ;;  %v8453_v24 = vand.u32 4294901760, %v6121_v30  ;;  %v8457_v37 = vand.u32 4294901760, %v6223_v41  ;;  %v8459_v2 = vand.u32 4294901760, %v6235_v46 }
  0x31   : > { %vm4237_vm3 = vcmask 154624  }
  0x33   : > { %5007 = vmatpush1.bf16.msra.mxu0 %v5006_v61  ;;  %v6330_v61 = vpack.c.bf16 %v347_v5, %v344_v4  ;;  %v6349_v4 = vpack.c.bf16 %v8447_v1, %v535_v23  ;;  %v8448_v5 = vand.u32 4294901760, %v6085_v17  ;;  %v6368_v23 = vpack.c.bf16 %v8453_v24, %v8452_v10  ;;  %v286_v24 = vld [vmem:[%s6254_s10 + $0x28] sm:$0xff] }
  0x34   : > { %5008 = vmatprep.subr.bf16.mxu0 %v8339_v3  ;;  %v663_v10 = vand.u32 4294901760, %v662_v57  ;;  %v5018_v57 = vpack.c.bf16 %v6080_v16, %v6075_v15  ;;  %v8464_v16 = vand.u32 4294901760, %v6065_v13 }
  0x35   : > { %4965 = vmatpush1.bf16.msra.mxu1 %v6330_v61  ;;  %v6355_v11 = vpack.c.bf16 %v8449_v51, %v8448_v5  ;;  %v6387_v5 = vsel %vm321_vm0, %v284_v28, 0  ;;  %v8458_v51 = vand.u32 4294901760, %v6228_v42  ;;  %v6403_v28 = vpack.c.bf16 %v640_v43, %v633_v49 }
  0x36   : > { %4966 = vmatprep.subr.bf16.mxu1 %v8339_v3  ;;  %v6421_v49 = vsel %vm321_vm0, %v286_v24, 0  ;;  %v6443_v24 = vld [vmem:[%s6254_s10 + $0x20] sm:$0xff] }
  0x37   : > { %5010 = vmatpush1.bf16.msra.mxu0 %v5009_v36  ;;  %v8454_v36 = vand.u32 4294901760, %v6196_v59  ;;  %v6393_v6 = vpack.c.bf16 %v8459_v2, %v8458_v51  ;;  %v6407_v51 = vand.u32 4294901760, %v6371_v35  ;;  %v6409_v2 = vpack.c.bf16 %v654_v29, %v647_v34  ;;  %v288_v29 = vld [vmem:[%s6254_s10 + $0x38] sm:$0xff] }
  0x38   : > { %5011 = vmatprep.subr.bf16.mxu0 %v8339_v3  ;;  %v8465_v34 = vand.u32 4294901760, %v6070_v14  ;;  %v6447_v13 = vsel %vm321_vm0, %v288_v29, 0  ;;  %v290_v14 = vld [vmem:[%s6254_s10 + $0x48] sm:$0xff] }
  0x39   : > { %v6377_v38 = vpack.c.bf16 %v8455_v31, %v8454_v36  ;;  %4968 = vmatpush1.bf16.msra.mxu1 %v6343_v0  ;;  %v8460_v36 = vand.u32 4294901760, %v6051_v8  ;;  %v8461_v31 = vand.u32 4294901760, %v6056_v9  ;;  %v6414_v8 = vand.u32 4294901760, %v6387_v5  ;;  %v6417_v9 = vld [vmem:[%s6254_s10 + $0x10] sm:$0xff] }
  0x3a   : > { %4969 = vmatprep.subr.bf16.mxu1 %v8339_v3  ;;  %v6428_v15 = vand.u32 4294901760, %v6417_v9  ;;  %v6434_v43 = vpack.c.bf16 %v8465_v34, %v8464_v16  ;;  %v6466_v29 = vand.u32 4294901760, %v6447_v13  ;;  %v6469_v16 = vld [vmem:[%s6254_s10 + $0x30] sm:$0xff]  ;;  %v8472_v34 = vand.u32 4294901760, %v6165_v47  ;;  %v294_v47 = vld [vmem:[%s6254_s10 + $0x68] sm:$0xff] }
  0x3b   : > { %5013 = vmatpush1.bf16.msra.mxu0 %v5012_v58  ;;  %v8456_v58 = vand.u32 4294901760, %v6214_v32  ;;  %8462 = vst [vmem:[#allocation3_spill] sm:$0xff] %v6414_v8 }
  0x3c   : > { %5014 = vmatprep.subr.bf16.mxu0 %v8339_v3  ;;  %8463 = vst [vmem:[#allocation4_spill] sm:$0xff] %v6428_v15  ;;  %8466 = vst [vmem:[#allocation5_spill] sm:$0xff] %v6434_v43 }
  0x3d   : > { %v6383_v1 = vpack.c.bf16 %v8457_v37, %v8456_v58  ;;  %v6401_v58 = vpack.c.bf16 %v8461_v31, %v8460_v36  ;;  %v8337_v37 = vmov 0.0   ;;  %v8468_v36 = vand.u32 4294901760, %v6152_v40  ;;  %8469 = vst [vmem:[#allocation6_spill] sm:$0xff] %v6466_v29  ;;  %v292_v40 = vld [vmem:[%s6254_s10 + $0x58] sm:$0xff] }
  0x3f   : > { %5016 = vmatpush1.bf16.msra.mxu0 %v5015_v25  ;;  %4971 = vmatpush1.bf16.msra.mxu1 %v6401_v58  ;;  %v5021_v25 = vpack.c.bf16 %v6094_v19, %v6085_v17  ;;  %v6454_v17 = vand.u32 4294901760, %v6443_v24  ;;  %v8467_v19 = vand.u32 4294901760, %v6147_v39  ;;  %v6473_v39 = vsel %vm321_vm0, %v290_v14, 0 }
  0x40   : > { %658 = vmatprep.subr.mxu0 %v8337_v37  ;;  %4972 = vmatprep.subr.bf16.mxu1 %v8339_v3  ;;  %v5027_v14 = vpack.c.bf16 %v6121_v30, %v6113_v26  ;;  %v6510_v30 = vsub.f32 %v6292_v50, %v6308_v18  ;;  %v6525_v37 = vld [vmem:[%s6254_s10 + $0x50] sm:$0xff]  ;;  %v8479_v50 = vand.u32 4294901760, %v6182_v54  ;;  %v6562_v54 = vsub.f32 %v6387_v5, %v6414_v8 }
  0x41   : > { %v6460_v31 = vpack.c.bf16 %v8468_v36, %v8467_v19  ;;  %v6492_v19 = vand.u32 4294901760, %v6473_v39  ;;  %v6495_v36 = vld [vmem:[%s6254_s10 + $0x40] sm:$0xff] }
  0x42   : > { %v6506_v26 = vand.u32 4294901760, %v6495_v36 }
  0x43   : > { %664 = vmatpush1.msra.mxu0 %v663_v10  ;;  %v6440_v10 = vand.u32 4294901760, %v6421_v49  ;;  %4974 = vmatpush1.bf16.msra.mxu1 %v6434_v43  ;;  %8473 = vst [vmem:[#allocation8_spill] sm:$0xff] %v6492_v19 }
  0x44   : > { %5017 = vmatprep.subr.bf16.mxu0 %v8339_v3  ;;  %694 = vmatmul.mubr.f32.vlgmr.msra.gmra.mrb[0].mxu0 %v6407_v51  ;;  %8474 = vst [vmem:[#allocation9_spill] sm:$0xff] %v6506_v26 }
  0x45   : > { %5019 = vmatpush1.bf16.msra.mxu0 %v5018_v57  ;;  %699 = vmatprep.mubr.f32.mxu0 %v6414_v8  ;;  %v5024_v57 = vpack.c.bf16 %v6104_v21, %v6099_v20  ;;  %v6480_v20 = vand.u32 4294901760, %v6469_v16  ;;  %v8471_v21 = vand.u32 4294901760, %v6157_v44  ;;  %v6499_v44 = vsel %vm321_vm0, %v292_v40, 0 }
  0x46   : > { %5020 = vmatprep.subr.bf16.mxu0 %v8339_v3  ;;  %4975 = vmatprep.subr.bf16.mxu1 %v8339_v3  ;;  %v6522_v62 = vand.u32 4294901760, %v6499_v44 }
  0x47   : > { %4977 = vmatpush1.bf16.msra.mxu1 %v6460_v31  ;;  %8470 = vst [vmem:[#allocation7_spill] sm:$0xff] %v6480_v20 }
  0x48   : > { %701 = vmatmul.mubr.f32.gmra.mrb[2].mxu0 %v6428_v15  ;;  %4978 = vmatprep.subr.bf16.mxu1 %v8339_v3  ;;  %8477 = vst [vmem:[#allocation10_spill] sm:$0xff] %v6522_v62 }
  0x49   : > { %5022 = vmatpush1.bf16.msra.mxu0 %v5021_v25  ;;  %706 = vmatprep.mubr.f32.mxu0 %v6440_v10  ;;  %v6486_v25 = vpack.c.bf16 %v8472_v34, %v8471_v21  ;;  %v8476_v21 = vand.u32 4294901760, %v6177_v53  ;;  %v5030_v34 = vpack.c.bf16 %v6201_v60, %v6196_v59  ;;  %v8341_v53 = vand.u32 4294901760, %v6510_v30 }
  0x4a   : > { %5023 = vmatprep.subr.bf16.mxu0 %v8339_v3  ;;  %v6535_v59 = vsub.f32 %v6371_v35, %v6407_v51  ;;  %v6540_v60 = vand.u32 4294901760, %v6525_v37  ;;  %v5033_v35 = vpack.c.bf16 %v6223_v41, %v6214_v32  ;;  %v6569_v32 = vsub.f32 %v6417_v9, %v6428_v15 }
  0x4b   : > { %4980 = vmatpush1.bf16.msra.mxu1 %v6486_v25  ;;  %v5036_v9 = vpack.c.bf16 %v6235_v46, %v6228_v42  ;;  %v8486_v15 = vand.u32 4294901760, %v6562_v54  ;;  %v8487_v46 = vmov 0.0  }
  0x4c   : > { %708 = vmatmul.mubr.f32.gmra.mrb[4].mxu0 %v6454_v17  ;;  %4981 = vmatprep.subr.bf16.mxu1 %v8339_v3  ;;  %8478 = vst [vmem:[#allocation11_spill] sm:$0xff] %v6540_v60  ;;  %v8357_v41 = vand.u32 4294901760, %v6569_v32 }
  0x4d   : > { %5025 = vmatpush1.bf16.msra.mxu0 %v5024_v57  ;;  %713 = vmatprep.mubr.f32.mxu0 %v6466_v29  ;;  %v8475_v57 = vand.u32 4294901760, %v6170_v48  ;;  %v6529_v48 = vsel %vm321_vm0, %v294_v47, 0 }
  0x4e   : > { %5026 = vmatprep.subr.bf16.mxu0 %v8339_v3 }
  0x4f   : > { %v6516_v40 = vpack.c.bf16 %v8476_v21, %v8475_v57  ;;  %v429_v57 = vsub.f32 %v6510_v30, %v8341_v53  ;;  %v6555_v21 = vand.u32 4294901760, %v6529_v48  ;;  %v8484_v53 = vand.u32 4294901760, %v6249_v56 }
  0x50   : > { %715 = vmatmul.mubr.f32.gmra.mrb[6].mxu0 %v6480_v20  ;;  %v444_v56 = vsub.f32 %v6562_v54, %v8486_v15 }
  0x51   : > { %5028 = vmatpush1.bf16.msra.mxu0 %v5027_v14  ;;  %720 = vmatprep.mubr.f32.mxu0 %v6492_v19  ;;  %v8480_v14 = vand.u32 4294901760, %v6208_v63  ;;  %8481 = vst [vmem:[#allocation12_spill] sm:$0xff] %v6555_v21  ;;  %v8344_v63 = vand.u32 4294901760, %v6535_v59 }
  0x52   : > { %5029 = vmatprep.subr.bf16.mxu0 %v8339_v3  ;;  %4983 = vmatpush1.bf16.msra.mxu1 %v6516_v40  ;;  %v445_v15 = vand.u32 4294901760, %v444_v56  ;;  %v5042_v56 = vpack.c.bf16 %v6302_v22, %v6297_v55 }
  0x53   : > { %4984 = vmatprep.subr.bf16.mxu1 %v8339_v3  ;;  %v6546_v47 = vpack.c.bf16 %v8480_v14, %v8479_v50  ;;  %v6558_v3 = vld [vmem:[%s6254_s10 + $0x60] sm:$0xff]  ;;  %v8482_v50 = vmov 0.0|0.0   ;;  %v435_v5 = vsub.f32 %v6535_v59, %v8344_v63  ;;  %v6591_v63 = vsub.f32 %v6421_v49, %v6440_v10 }
  0x54   : > { %722 = vmatmul.mubr.f32.gmra.mrb[8].mxu0 %v6506_v26  ;;  %v6578_v14 = vand.u32 4294901760, %v6558_v3 }
  0x55   : > { %5031 = vmatpush1.bf16.msra.mxu0 %v5030_v34  ;;  %727 = vmatprep.mubr.f32.mxu0 %v6522_v62  ;;  %v430_v34 = vand.u32 4294901760, %v429_v57  ;;  %v8485_v57 = vand.u32 4294901760, %v6268_v52  ;;  %v6601_v52 = vsub.f32 %v6443_v24, %v6454_v17  ;;  %v8356_v42 = vand.u32 4294901760, %v6591_v63 }
  0x56   : > { %5032 = vmatprep.subr.bf16.mxu0 %v8482_v50  ;;  %4986 = vmatpush1.bf16.msra.mxu1 %v6546_v47  ;;  %8483 = vst [vmem:[#allocation13_spill] sm:$0xff] %v6578_v14  ;;  %v436_v49 = vand.u32 4294901760, %v435_v5  ;;  %v6614_v24 = vsub.f32 %v6447_v13, %v6466_v29  ;;  %v6629_v13 = vsub.f32 %v6469_v16, %v6480_v20 }
  0x57   : > { %4987 = vmatprep.subr.bf16.mxu1 %v8482_v50  ;;  %v6584_v8 = vpack.c.bf16 %v8485_v57, %v8484_v53  ;;  %431 = vmatprep.mubr.f32.mxu1 %v430_v34  ;;  %v450_v53 = vsub.f32 %v6569_v32, %v8357_v41  ;;  %v8347_v34 = vand.u32 4294901760, %v6601_v52  ;;  %v459_v5 = vsub.f32 %v6591_v63, %v8356_v42  ;;  %v1386_v42 = vld [vmem:[%s8305_s3 + $0x38] sm:$0xff] }
  0x58   : > { %729 = vmatmul.mubr.f32.gmra.mrb[10].mxu0 %v6540_v60  ;;  %v8355_v57 = vand.u32 4294901760, %v6614_v24 }
  0x59   : > { %5034 = vmatpush1.bf16.msra.mxu0 %v5033_v35  ;;  %734 = vmatprep.mubr.f32.mxu0 %v6555_v21  ;;  %v5039_v35 = vpack.c.bf16 %v6274_v12, %v6263_v33  ;;  %v451_v12 = vand.u32 4294901760, %v450_v53  ;;  %v465_v33 = vsub.f32 %v6601_v52, %v8347_v34  ;;  %v8354_v34 = vand.u32 4294901760, %v6629_v13 }
  0x5a   : > { %5035 = vmatprep.subr.bf16.mxu0 %v8482_v50  ;;  %4989 = vmatpush1.bf16.msra.mxu1 %v6584_v8  ;;  %v474_v53 = vsub.f32 %v6614_v24, %v8355_v57  ;;  %v1385_v57 = vld [vmem:[%s8305_s3 + $0x30] sm:$0xff] }
  0x5b   : > { %397 = vmatprep.subr.mxu1 %v8487_v46  ;;  %v480_v22 = vsub.f32 %v6629_v13, %v8354_v34 }
  0x5c   : > { %736 = vmatmul.mubr.f32.gmra.mrb[12].mxu0 %v6578_v14  ;;  %v475_v55 = vand.u32 4294901760, %v474_v53 }
  0x5d   : > { %5037 = vmatpush1.bf16.msra.mxu0 %v5036_v9  ;;  %845 = vmatprep.mubr.f32.mxu0 %v6510_v30  ;;  %v460_v9 = vand.u32 4294901760, %v459_v5 }
  0x5e   : > { %5038 = vmatprep.subr.bf16.mxu0 %v8482_v50  ;;  %399 = vmatpush1.msra.mxu1 %v6313_v45 }
  0x5f   : > { %437 = vmatmul.mubr.f32.vlgmr.msra.gmra.mrb[0].mxu1 %v436_v49  ;;  %5125 = vmatprep.subr.bf16.mxu1 %v8482_v50  ;;  %v6635_v49 = vsub.f32 %v6473_v39, %v6492_v19  ;;  %v6652_v39 = vsub.f32 %v6499_v44, %v6522_v62  ;;  %v1417_v19 = vand.u32 4294901760, %v1386_v42 }
  0x60   : > { %446 = vmatprep.mubr.f32.mxu1 %v445_v15  ;;  %v466_v15 = vand.u32 4294901760, %v465_v33  ;;  %v6662_v33 = vsub.f32 %v6525_v37, %v6540_v60  ;;  %v1414_v60 = vand.u32 4294901760, %v1385_v57 }
  0x61   : > { %5040 = vmatpush1.bf16.msra.mxu0 %v5039_v35  ;;  %v8350_v16 = vand.u32 4294901760, %v6635_v49  ;;  %v6645_v35 = vsub.f32 %v6495_v36, %v6506_v26 }
  0x62   : > { %5041 = vmatprep.subr.bf16.mxu0 %v8482_v50  ;;  %v8353_v37 = vand.u32 4294901760, %v6662_v33 }
  0x63   : > { %452 = vmatmul.mubr.f32.gmra.mrb[2].mxu1 %v451_v12  ;;  %v489_v5 = vsub.f32 %v6635_v49, %v8350_v16  ;;  %v8349_v36 = vand.u32 4294901760, %v6645_v35  ;;  %v8348_v12 = vand.u32 4294901760, %v6652_v39 }
  0x64   : > { %461 = vmatprep.mubr.f32.mxu1 %v460_v9  ;;  %v481_v9 = vand.u32 4294901760, %v480_v22 }
  0x65   : > { %5043 = vmatpush1.bf16.msra.mxu0 %v5042_v56  ;;  %v495_v44 = vsub.f32 %v6645_v35, %v8349_v36  ;;  %v6670_v56 = vsub.f32 %v6529_v48, %v6555_v21  ;;  %v490_v53 = vand.u32 4294901760, %v489_v5  ;;  %v6684_v48 = vsub.f32 %v6558_v3, %v6578_v14 }
  0x66   : > { %813 = vmatprep.subr.mxu0 %v8487_v46  ;;  %v510_v5 = vsub.f32 %v6662_v33, %v8353_v37 }
  0x67   : > { %467 = vmatmul.mubr.f32.gmra.mrb[4].mxu1 %v466_v15  ;;  %v504_v15 = vsub.f32 %v6652_v39, %v8348_v12  ;;  %v496_v22 = vand.u32 4294901760, %v495_v44  ;;  %v8351_v16 = vand.u32 4294901760, %v6684_v48 }
  0x68   : > { %476 = vmatprep.mubr.f32.mxu1 %v475_v55  ;;  %v8352_v55 = vand.u32 4294901760, %v6670_v56  ;;  %v511_v3 = vand.u32 4294901760, %v510_v5 }
  0x69   : > { %816 = vmatpush1.msra.mxu0 %v6320_v27  ;;  %v505_v12 = vand.u32 4294901760, %v504_v15  ;;  %v1379_v15 = vld [vmem:[%s8305_s3] sm:$0xff] }
  0x6a   : > { %5044 = vmatprep.subr.bf16.mxu0 %v8482_v50  ;;  %848 = vmatmul.mubr.f32.vlgmr.msra.gmra.mrb[0].mxu0 %v6535_v59  ;;  %v519_v36 = vsub.f32 %v6670_v56, %v8352_v55  ;;  %v1384_v55 = vld [vmem:[%s8305_s3 + $0x28] sm:$0xff] }
  0x6b   : > { %5046 = vmatpush1.bf16.msra.mxu0 %v6330_v61  ;;  %854 = vmatprep.mubr.f32.mxu0 %v6562_v54 }
  0x6c   : > { %5047 = vmatprep.subr.bf16.mxu0 %v8482_v50  ;;  %482 = vmatmul.mubr.f32.gmra.mrb[6].mxu1 %v481_v9  ;;  %v525_v9 = vsub.f32 %v6684_v48, %v8351_v16  ;;  %v520_v44 = vand.u32 4294901760, %v519_v36  ;;  %v1381_v36 = vld [vmem:[%s8305_s3 + $0x10] sm:$0xff]  ;;  %v1383_v16 = vld [vmem:[%s8305_s3 + $0x20] sm:$0xff] }
  0x6d   : > { %491 = vmatprep.mubr.f32.mxu1 %v490_v53  ;;  %v1408_v34 = vand.u32 4294901760, %v1383_v16 }
  0x6e   : > { %857 = vmatmul.mubr.f32.gmra.mrb[2].mxu0 %v6569_v32  ;;  %v526_v53 = vand.u32 4294901760, %v525_v9  ;;  %v1402_v9 = vand.u32 4294901760, %v1381_v36 }
  0x6f   : > { %5049 = vmatpush1.bf16.msra.mxu0 %v6343_v0  ;;  %863 = vmatprep.mubr.f32.mxu0 %v6591_v63  ;;  %v6745_v20 = vsub.f32 %v1383_v16, %v1408_v34 }
  0x70   : > { %5050 = vmatprep.subr.bf16.mxu0 %v8482_v50  ;;  %497 = vmatmul.mubr.f32.gmra.mrb[8].mxu1 %v496_v22  ;;  %v1380_v22 = vld [vmem:[%s8305_s3 + $0x8] sm:$0xff]  ;;  %v6738_v62 = vsub.f32 %v1381_v36, %v1402_v9 }
  0x71   : > { %506 = vmatprep.mubr.f32.mxu1 %v505_v12  ;;  %v1396_v12 = vand.u32 4294901760, %v1379_v15  ;;  %v1399_v5 = vand.u32 4294901760, %v1380_v22 }
  0x72   : > { %866 = vmatmul.mubr.f32.gmra.mrb[4].mxu0 %v6601_v52 }
  0x73   : > { %5052 = vmatpush1.bf16.msra.mxu0 %v6401_v58  ;;  %872 = vmatprep.mubr.f32.mxu0 %v6614_v24  ;;  %v6731_v41 = vpack.c.bf16 %v1399_v5, %v1396_v12  ;;  %v6733_v14 = vsub.f32 %v1379_v15, %v1396_v12  ;;  %v6735_v21 = vsub.f32 %v1380_v22, %v1399_v5  ;;  %v1393_v12 = vld [vmem:[%s8305_s3 + $0x70] sm:$0xff]  ;;  %v1394_v5 = vld [vmem:[%s8305_s3 + $0x78] sm:$0xff] }
  0x74   : > { %5053 = vmatprep.subr.bf16.mxu0 %v8482_v50  ;;  %512 = vmatmul.mubr.f32.gmra.mrb[10].mxu1 %v511_v3  ;;  %v1382_v3 = vld [vmem:[%s8305_s3 + $0x18] sm:$0xff]  ;;  %v6749_v15 = vsub.f32 %v1385_v57, %v1414_v60  ;;  %v8492_v57 = vand.u32 4294901760, %v6591_v63  ;;  %v8497_v63 = vand.u32 4294901760, %v6645_v35 }
  0x75   : > { %521 = vmatprep.mubr.f32.mxu1 %v520_v44  ;;  %v1405_v37 = vand.u32 4294901760, %v1382_v3  ;;  %v1411_v44 = vand.u32 4294901760, %v1384_v55  ;;  %5127 = vmatpush3.bf16.msra.mxu1 %v6731_v41 }
  0x76   : > { %875 = vmatmul.mubr.f32.gmra.mrb[6].mxu0 %v6629_v13  ;;  %5128 = vmatprep.subr.bf16.mxu1 %v8482_v50 }
  0x77   : > { %5055 = vmatpush1.bf16.msra.mxu0 %v6434_v43  ;;  %881 = vmatprep.mubr.f32.mxu0 %v6635_v49  ;;  %v6740_v26 = vsub.f32 %v1382_v3, %v1405_v37  ;;  %v6743_v43 = vpack.c.bf16 %v1405_v37, %v1402_v9  ;;  %v6747_v29 = vsub.f32 %v1384_v55, %v1411_v44  ;;  %v8510_v37 = vld [vmem:[#allocation10_spill] sm:$0xff]  ;;  %v8512_v55 = vld [vmem:[#allocation12_spill] sm:$0xff]  ;;  %v1438_v9 = vand.u32 4294901760, %v1393_v12 }
  0x78   : > { %5056 = vmatprep.subr.bf16.mxu0 %v8482_v50  ;;  %527 = vmatmul.mubr.f32.gmra.mrb[12].mxu1 %v526_v53  ;;  %v6753_v53 = vsub.f32 %v1386_v42, %v1417_v19  ;;  %v6759_v16 = vpack.c.bf16 %v1411_v44, %v1408_v34  ;;  %v6767_v42 = vpack.c.bf16 %v1417_v19, %v1414_v60  ;;  %v8488_v34 = vand.u32 4294901760, %v6510_v30 }
  0x79   : > { %5130 = vmatpush3.bf16.msra.mxu1 %v6743_v43  ;;  %v8489_v19 = vand.u32 4294901760, %v6535_v59  ;;  %v8490_v30 = vand.u32 4294901760, %v6562_v54  ;;  %v8491_v60 = vand.u32 4294901760, %v6569_v32  ;;  %v8493_v59 = vand.u32 4294901760, %v6601_v52  ;;  %4677 = vmatprep.mubr.msk.f32.mxu1 %vm5959_vm1, %v8487_v46 }
  0x7a   : > { %884 = vmatmul.mubr.f32.gmra.mrb[8].mxu0 %v6645_v35  ;;  %5131 = vmatprep.subr.bf16.mxu1 %v8482_v50  ;;  %v8495_v54 = vand.u32 4294901760, %v6629_v13  ;;  %v8499_v32 = vand.u32 4294901760, %v6662_v33  ;;  %v8501_v52 = vand.u32 4294901760, %v6684_v48  ;;  %v8502_v13 = vand.u32 4294901760, %v6320_v27  ;;  %v8503_v35 = vld [vmem:[#allocation3_spill] sm:$0xff]  ;;  %v8504_v27 = vld [vmem:[#allocation4_spill] sm:$0xff] }
  0x7b   : > { %5058 = vmatpush1.bf16.msra.mxu0 %v6460_v31  ;;  %890 = vmatprep.mubr.f32.mxu0 %v6652_v39  ;;  %v1441_v44 = vand.u32 4294901760, %v1394_v5 }
  0x7c   : > { %5059 = vmatprep.subr.bf16.mxu0 %v8482_v50 }
  0x7d   : > { %5133 = vmatpush3.bf16.msra.mxu1 %v6759_v16 }
  0x7e   : > { %893 = vmatmul.mubr.f32.gmra.mrb[10].mxu0 %v6662_v33  ;;  %5134 = vmatprep.subr.bf16.mxu1 %v8482_v50  ;;  %v8507_v33 = vld [vmem:[#allocation5_spill] sm:$0xff] }
  0x7f   : > { %5061 = vmatpush1.bf16.msra.mxu0 %v6486_v25  ;;  %899 = vmatprep.mubr.f32.mxu0 %v6670_v56 }
  0x80   : > { %5062 = vmatprep.subr.bf16.mxu0 %v8482_v50 }
  0x81   : > { %5136 = vmatpush3.bf16.msra.mxu1 %v6767_v42 }
  0x82   : > { %902 = vmatmul.mubr.f32.gmra.mrb[12].mxu0 %v6684_v48  ;;  %5137 = vmatprep.subr.bf16.mxu1 %v8482_v50  ;;  %v8513_v48 = vld [vmem:[#allocation13_spill] sm:$0xff] }
  0x83   : > { %5064 = vmatpush1.bf16.msra.mxu0 %v6516_v40  ;;  %993 = vmatprep.mubr.f32.mxu0 %v8488_v34  ;;  %v8390_v34 = vand.u32 4294901760, %v6733_v14 }
  0x84   : > { %5065 = vmatprep.subr.bf16.mxu0 %v8482_v50 }
  0x87   : > { %5067 = vmatpush1.bf16.msra.mxu0 %v6546_v47 }
  0x88   : > { %5068 = vmatprep.subr.bf16.mxu0 %v8482_v50 }
  0x8b   : > { %5070 = vmatpush1.bf16.msra.mxu0 %v6584_v8 }
  0x8c   : > { %961 = vmatprep.subr.mxu0 %v8487_v46 }
  0x8f   : > { %963 = vmatpush1.msra.mxu0 %v6313_v45 }
  0x90   : > { %5071 = vmatprep.subr.bf16.mxu0 %v8482_v50  ;;  %997 = vmatmul.mubr.f32.vlgmr.msra.gmra.mrb[0].mxu0 %v8489_v19  ;;  %v8389_v19 = vand.u32 4294901760, %v6735_v21 }
  0x91   : > { %5073 = vmatpush1.bf16.msra.mxu0 %v6349_v4  ;;  %1004 = vmatprep.mubr.f32.mxu0 %v8490_v30  ;;  %v8494_v4 = vand.u32 4294901760, %v6614_v24 }
  0x92   : > { %5074 = vmatprep.subr.bf16.mxu0 %v8482_v50 }
  0x94   : > { %1008 = vmatmul.mubr.f32.gmra.mrb[2].mxu0 %v8491_v60  ;;  %v6924_v60 = vpack.c.bf16 %v1441_v44, %v1438_v9 }
  0x95   : > { %5076 = vmatpush1.bf16.msra.mxu0 %v6355_v11  ;;  %1015 = vmatprep.mubr.f32.mxu0 %v8492_v57  ;;  %v8496_v11 = vand.u32 4294901760, %v6635_v49  ;;  %v1550_v57 = vsub.f32 %v6733_v14, %v8390_v34 }
  0x96   : > { %5077 = vmatprep.subr.bf16.mxu0 %v8482_v50 }
  0x98   : > { %1019 = vmatmul.mubr.f32.gmra.mrb[4].mxu0 %v8493_v59  ;;  %v1557_v59 = vsub.f32 %v6735_v21, %v8389_v19 }
  0x99   : > { %5079 = vmatpush1.bf16.msra.mxu0 %v6362_v7  ;;  %1026 = vmatprep.mubr.f32.mxu0 %v8494_v4  ;;  %v8498_v7 = vand.u32 4294901760, %v6652_v39  ;;  %v8506_v39 = vld [vmem:[#allocation7_spill] sm:$0xff] }
  0x9a   : > { %5080 = vmatprep.subr.bf16.mxu0 %v8482_v50 }
  0x9c   : > { %1030 = vmatmul.mubr.f32.gmra.mrb[6].mxu0 %v8495_v54  ;;  %v1551_v54 = vand.u32 4294901760, %v1550_v57 }
  0x9d   : > { %5082 = vmatpush1.bf16.msra.mxu0 %v6368_v23  ;;  %1037 = vmatprep.mubr.f32.mxu0 %v8496_v11  ;;  %v8500_v23 = vand.u32 4294901760, %v6670_v56  ;;  %v8508_v56 = vld [vmem:[#allocation8_spill] sm:$0xff]  ;;  %v1558_v11 = vand.u32 4294901760, %v1557_v59 }
  0x9e   : > { %5083 = vmatprep.subr.bf16.mxu0 %v8482_v50 }
  0xa0   : > { %1041 = vmatmul.mubr.f32.gmra.mrb[8].mxu0 %v8497_v63 }
  0xa1   : > { %5085 = vmatpush1.bf16.msra.mxu0 %v6377_v38  ;;  %1048 = vmatprep.mubr.f32.mxu0 %v8498_v7  ;;  %v1387_v38 = vld [vmem:[%s8305_s3 + $0x40] sm:$0xff]  ;;  %v8388_v7 = vand.u32 4294901760, %v6738_v62 }
  0xa2   : > { %5086 = vmatprep.subr.bf16.mxu0 %v8482_v50 }
  0xa4   : > { %1052 = vmatmul.mubr.f32.gmra.mrb[10].mxu0 %v8499_v32  ;;  %v8387_v32 = vand.u32 4294901760, %v6740_v26 }
  0xa5   : > { %5088 = vmatpush1.bf16.msra.mxu0 %v6383_v1  ;;  %1059 = vmatprep.mubr.f32.mxu0 %v8500_v23  ;;  %v1388_v1 = vld [vmem:[%s8305_s3 + $0x48] sm:$0xff] }
  0xa6   : > { %5089 = vmatprep.subr.bf16.mxu0 %v8482_v50  ;;  %v1423_v24 = vand.u32 4294901760, %v1388_v1 }
  0xa8   : > { %1063 = vmatmul.mubr.f32.gmra.mrb[12].mxu0 %v8501_v52  ;;  %v6842_v49 = vsub.f32 %v1388_v1, %v1423_v24 }
  0xa9   : > { %5091 = vmatpush1.bf16.msra.mxu0 %v6393_v6  ;;  %1190 = vmatprep.mubr.f32.mxu0 %v6308_v18  ;;  %v1420_v6 = vand.u32 4294901760, %v1387_v38 }
  0xaa   : > { %5092 = vmatprep.subr.bf16.mxu0 %v8482_v50 }
  0xad   : > { %5094 = vmatpush1.bf16.msra.mxu0 %v6403_v28  ;;  %v6838_v28 = vpack.c.bf16 %v1423_v24, %v1420_v6  ;;  %v1564_v24 = vsub.f32 %v6738_v62, %v8388_v7 }
  0xae   : > { %5095 = vmatprep.subr.bf16.mxu0 %v8482_v50 }
  0xaf   : > { %5139 = vmatpush3.bf16.msra.mxu1 %v6838_v28 }
  0xb0   : > { %5140 = vmatprep.subr.bf16.mxu1 %v8482_v50 }
  0xb1   : > { %5097 = vmatpush1.bf16.msra.mxu0 %v6409_v2  ;;  %v6840_v2 = vsub.f32 %v1387_v38, %v1420_v6  ;;  %v6946_v6 = vpack.c.bf16 %v1558_v11, %v1551_v54 }
  0xb2   : > { %1158 = vmatprep.subr.mxu0 %v8487_v46 }
  0xb5   : > { %1162 = vmatpush1.msra.mxu0 %v8502_v13  ;;  %v1571_v13 = vsub.f32 %v6740_v26, %v8387_v32 }
  0xb6   : > { %5098 = vmatprep.subr.bf16.mxu0 %v8482_v50  ;;  %1192 = vmatmul.mubr.f32.vlgmr.msra.gmra.mrb[0].mxu0 %v6407_v51 }
  0xb7   : > { %5100 = vmatpush1.bf16.msra.mxu0 %v6330_v61  ;;  %1197 = vmatprep.mubr.f32.mxu0 %v8503_v35  ;;  %v8505_v61 = vld [vmem:[#allocation6_spill] sm:$0xff] }
  0xb8   : > { %5101 = vmatprep.subr.bf16.mxu0 %v8482_v50 }
  0xba   : > { %1199 = vmatmul.mubr.f32.gmra.mrb[2].mxu0 %v8504_v27 }
  0xbb   : > { %5103 = vmatpush1.bf16.msra.mxu0 %v6343_v0  ;;  %1204 = vmatprep.mubr.f32.mxu0 %v6440_v10  ;;  %v8509_v0 = vld [vmem:[#allocation9_spill] sm:$0xff] }
  0xbc   : > { %5104 = vmatprep.subr.bf16.mxu0 %v8482_v50 }
  0xbe   : > { %1206 = vmatmul.mubr.f32.gmra.mrb[4].mxu0 %v6454_v17 }
  0xbf   : > { %5106 = vmatpush1.bf16.msra.mxu0 %v6401_v58  ;;  %1211 = vmatprep.mubr.f32.mxu0 %v8505_v61  ;;  %v8511_v58 = vld [vmem:[#allocation11_spill] sm:$0xff] }
  0xc0   : > { %5107 = vmatprep.subr.bf16.mxu0 %v8482_v50 }
  0xc2   : > { %1213 = vmatmul.mubr.f32.gmra.mrb[6].mxu0 %v8506_v39 }
  0xc3   : > { %5109 = vmatpush1.bf16.msra.mxu0 %v8507_v33  ;;  %1218 = vmatprep.mubr.f32.mxu0 %v8508_v56  ;;  %v1572_v33 = vand.u32 4294901760, %v1571_v13 }
  0xc4   : > { %5110 = vmatprep.subr.bf16.mxu0 %v8482_v50 }
  0xc6   : > { %1220 = vmatmul.mubr.f32.gmra.mrb[8].mxu0 %v8509_v0 }
  0xc7   : > { %5112 = vmatpush1.bf16.msra.mxu0 %v6460_v31  ;;  %1225 = vmatprep.mubr.f32.mxu0 %v8510_v37  ;;  %v1392_v31 = vld [vmem:[%s8305_s3 + $0x68] sm:$0xff] }
  0xc8   : > { %5113 = vmatprep.subr.bf16.mxu0 %v8482_v50 }
  0xca   : > { %1227 = vmatmul.mubr.f32.gmra.mrb[10].mxu0 %v8511_v58 }
  0xcb   : > { %5115 = vmatpush1.bf16.msra.mxu0 %v6486_v25  ;;  %1232 = vmatprep.mubr.f32.mxu0 %v8512_v55 }
  0xcc   : > { %5116 = vmatprep.subr.bf16.mxu0 %v8482_v50 }
  0xce   : > { %1234 = vmatmul.mubr.f32.gmra.mrb[12].mxu0 %v8513_v48 }
  0xcf   : > { %5118 = vmatpush1.bf16.msra.mxu0 %v6516_v40  ;;  %1323 = vmatprep.mubr.f32.mxu0 %v6308_v18  ;;  %v1389_v18 = vld [vmem:[%s8305_s3 + $0x50] sm:$0xff] }
  0xd0   : > { %5119 = vmatprep.subr.bf16.mxu0 %v8482_v50 }
  0xd3   : > { %5121 = vmatpush1.bf16.msra.mxu0 %v6546_v47  ;;  %v1435_v47 = vand.u32 4294901760, %v1392_v31 }
  0xd4   : > { %5122 = vmatprep.subr.bf16.mxu0 %v8482_v50 }
  0xd5   : > { %v6944_v1 = vsub.f32 %v1392_v31, %v1435_v47 }
  0xd7   : > { %5124 = vmatpush1.bf16.msra.mxu0 %v6584_v8 }
  0xd8   : > { %1293 = vmatprep.subr.mxu0 %v8487_v46 }
  0xdb   : > { %1295 = vmatpush1.msra.mxu0 %v6313_v45  ;;  %v1390_v45 = vld [vmem:[%s8305_s3 + $0x58] sm:$0xff] }
  0xdc   : > { %1325 = vmatmul.mubr.f32.vlgmr.msra.gmra.mrb[0].mxu0 %v6407_v51  ;;  %5269 = vmatprep.subr.bf16.mxu0 %v8482_v50  ;;  %v1426_v51 = vand.u32 4294901760, %v1389_v18  ;;  %v1429_v8 = vand.u32 4294901760, %v1390_v45 }
  0xdd   : > { %1330 = vmatprep.mubr.f32.mxu0 %v8503_v35  ;;  %v6954_v35 = vsub.f32 %v1393_v12, %v1438_v9 }
  0xde   : > { %v6938_v23 = vsub.f32 %v1389_v18, %v1426_v51  ;;  %v6940_v52 = vsub.f32 %v1390_v45, %v1429_v8 }
  0xe0   : > { %1332 = vmatmul.mubr.f32.gmra.mrb[2].mxu0 %v8504_v27  ;;  %v6956_v27 = vsub.f32 %v1394_v5, %v1441_v44  ;;  %v8382_v44 = vand.u32 4294901760, %v6840_v2 }
  0xe1   : > { %1337 = vmatprep.mubr.f32.mxu0 %v6440_v10  ;;  %v6898_v10 = vpack.c.bf16 %v1429_v8, %v1426_v51  ;;  %v8384_v8 = vand.u32 4294901760, %v6749_v15 }
  0xe2   : > { %v1606_v54 = vsub.f32 %v6840_v2, %v8382_v44 }
  0xe3   : > { %5142 = vmatpush3.bf16.msra.mxu1 %v6898_v10 }
  0xe4   : > { %1339 = vmatmul.mubr.f32.gmra.mrb[4].mxu0 %v6454_v17  ;;  %v1391_v17 = vld [vmem:[%s8305_s3 + $0x60] sm:$0xff]  ;;  %5143 = vmatprep.subr.bf16.mxu1 %v8482_v50 }
  0xe5   : > { %1344 = vmatprep.mubr.f32.mxu0 %v8505_v61  ;;  %v1432_v40 = vand.u32 4294901760, %v1391_v17 }
  0xe7   : > { %v6910_v36 = vpack.c.bf16 %v1435_v47, %v1432_v40  ;;  %v6942_v38 = vsub.f32 %v1391_v17, %v1432_v40  ;;  %v8383_v17 = vand.u32 4294901760, %v6753_v53  ;;  %v1592_v47 = vsub.f32 %v6749_v15, %v8384_v8 }
  0xe8   : > { %1346 = vmatmul.mubr.f32.gmra.mrb[6].mxu0 %v8506_v39  ;;  %v1565_v39 = vand.u32 4294901760, %v1564_v24  ;;  %v1607_v24 = vand.u32 4294901760, %v1606_v54 }
  0xe9   : > { %1351 = vmatprep.mubr.f32.mxu0 %v8508_v56  ;;  %5145 = vmatpush3.bf16.msra.mxu1 %v6910_v36  ;;  %v8386_v56 = vand.u32 4294901760, %v6745_v20  ;;  %v1593_v5 = vand.u32 4294901760, %v1592_v47  ;;  %v8375_v47 = vand.u32 4294901760, %v6942_v38 }
  0xea   : > { %5146 = vmatprep.subr.bf16.mxu1 %v8482_v50 }
  0xec   : > { %1353 = vmatmul.mubr.f32.gmra.mrb[8].mxu0 %v8509_v0  ;;  %v8385_v0 = vand.u32 4294901760, %v6747_v29 }
  0xed   : > { %1358 = vmatprep.mubr.f32.mxu0 %v8510_v37  ;;  %5148 = vmatpush3.bf16.msra.mxu1 %v6924_v60 }
  0xee   : > { %5149 = vmatprep.subr.bf16.mxu1 %v8482_v50 }
  0xf0   : > { %1360 = vmatmul.mubr.f32.gmra.mrb[10].mxu0 %v8511_v58  ;;  %v6964_v58 = vpack.c.bf16 %v1572_v33, %v1565_v39  ;;  %v8380_v39 = vand.u32 4294901760, %v6938_v23  ;;  %v8379_v33 = vand.u32 4294901760, %v6940_v52 }
  0xf1   : > { %1365 = vmatprep.mubr.f32.mxu0 %v8512_v55  ;;  %v1578_v55 = vsub.f32 %v6745_v20, %v8386_v56 }
  0xf3   : > { %v1579_v45 = vand.u32 4294901760, %v1578_v55 }
  0xf4   : > { %1367 = vmatmul.mubr.f32.gmra.mrb[12].mxu0 %v8513_v48  ;;  %v1585_v48 = vsub.f32 %v6747_v29, %v8385_v0 }
  0xf6   : > { %v1586_v51 = vand.u32 4294901760, %v1585_v48  ;;  %v1620_v48 = vsub.f32 %v6938_v23, %v8380_v39 }
  0xf8   : > { %v6976_v40 = vpack.c.bf16 %v1586_v51, %v1579_v45  ;;  %v1627_v45 = vsub.f32 %v6940_v52, %v8379_v33  ;;  %v1621_v51 = vand.u32 4294901760, %v1620_v48 }
 0x132   : > { %v6906_v25 = vpop.f32.mrb[0].mxu1 }
 0x133   : > { %v440_v22 = vpop.f32.mrb[1].mxu1 }
 0x134   : > { %v1599_v22 = vsub.f32 %v6753_v53, %v8383_v17 }
 0x136   : > { %v6918_v3 = vpop.f32.mrb[2].mxu1  ;;  %v1600_v9 = vand.u32 4294901760, %v1599_v22  ;;  %v8378_v22 = vand.u32 4294901760, %v6944_v1 }
 0x137   : > { %v455_v30 = vpop.f32.mrb[3].mxu1 }
 0x138   : > { %v8381_v30 = vand.u32 4294901760, %v6842_v49  ;;  %v6988_v59 = vpack.c.bf16 %v1600_v9, %v1593_v5  ;;  %v1634_v9 = vsub.f32 %v6942_v38, %v8375_v47 }
 0x13a   : > { %v6932_v4 = vpop.f32.mrb[4].mxu1  ;;  %v1613_v11 = vsub.f32 %v6842_v49, %v8381_v30  ;;  %v1635_v54 = vand.u32 4294901760, %v1634_v9  ;;  %v5174_v9 = vpack.c.bf16 %v6735_v21, %v6733_v14 }
 0x13b   : > { %v470_v63 = vpop.f32.mrb[5].mxu1 }
 0x13c   : > { %v1614_v13 = vand.u32 4294901760, %v1613_v11 }
 0x13e   : > { %v7000_v55 = vpack.c.bf16 %v1614_v13, %v1607_v24  ;;  %v8376_v24 = vand.u32 4294901760, %v6954_v35  ;;  %v8377_v13 = vand.u32 4294901760, %v6956_v27 }
 0x13f   : > { %v6960_v61 = vpop.f32.mrb[6].mxu1 }
 0x140   : > { %v485_v37 = vpop.f32.mrb[7].mxu1  ;;  %v1648_v48 = vsub.f32 %v6954_v35, %v8376_v24  ;;  %v5186_v24 = vpack.c.bf16 %v6842_v49, %v6840_v2 }
 0x143   : > { %v6972_v18 = vpop.f32.mrb[8].mxu1 }
 0x144   : > { %v500_v31 = vpop.f32.mrb[9].mxu1 }
 0x145   : > { %v1628_v31 = vand.u32 4294901760, %v1627_v45  ;;  %v1655_v45 = vsub.f32 %v6956_v27, %v8377_v13 }
 0x147   : > { %v6984_v12 = vpop.f32.mrb[10].mxu1  ;;  %v7010_v5 = vpack.c.bf16 %v1628_v31, %v1621_v51  ;;  %v1649_v51 = vand.u32 4294901760, %v1648_v48  ;;  %v1656_v31 = vand.u32 4294901760, %v1655_v45  ;;  %v5189_v48 = vpack.c.bf16 %v6940_v52, %v6938_v23 }
 0x148   : > { %v515_v57 = vpop.f32.mrb[11].mxu1 }
 0x149   : > { %v1641_v57 = vsub.f32 %v6944_v1, %v8378_v22  ;;  %v7028_v47 = vpack.c.bf16 %v1656_v31, %v1649_v51  ;;  %v4492_v31 = vld [vmem:[%s8304_s2] ss:$0 sm:$0xff] }
 0x14a   : > { %v439_v13 = vadd.f32 %v4492_v31, %v6906_v25  ;;  %v454_v30 = vadd.f32 %v4492_v31, %v6918_v3  ;;  %v469_v32 = vadd.f32 %v4492_v31, %v6932_v4  ;;  %v484_v3 = vadd.f32 %v4492_v31, %v6960_v61 }
 0x14b   : > { %v6996_v63 = vpop.f32.mrb[12].mxu1  ;;  %v1642_v11 = vand.u32 4294901760, %v1641_v57  ;;  %v5177_v57 = vpack.c.bf16 %v6740_v26, %v6738_v62 }
 0x14c   : > { %v530_v37 = vpop.f32.mrb[13].mxu1 }
 0x14d   : > { %v7020_v37 = vpack.c.bf16 %v1642_v11, %v1635_v54  ;;  %v5180_v54 = vpack.c.bf16 %v6747_v29, %v6745_v20  ;;  %v5183_v11 = vpack.c.bf16 %v6753_v53, %v6749_v15 }
 0x1af   : > { %v1326_v22 = vpop.f32.mrb[0].mxu0 }
 0x1b0   : > { %v5452_v33 = vadd.f32 %v1326_v22, %v439_v13  ;;  %v1328_v39 = vpop.f32.mrb[1].mxu0 }
 0x1b2   : > { %v1372_v44 = vmax.f32 %v5452_v33, 0.0 }
 0x1b3   : > { %v1333_v17 = vpop.f32.mrb[2].mxu0 }
 0x1b4   : > { %v7051_v8 = vand.u32 4294901760, %v1372_v44  ;;  %v5454_v0 = vadd.f32 %v1333_v17, %v454_v30  ;;  %v1335_v56 = vpop.f32.mrb[3].mxu0 }
 0x1b6   : > { %v7055_v7 = vsub.f32 %v1372_v44, %v7051_v8  ;;  %v1373_v19 = vmax.f32 %v5454_v0, 0.0  ;;  %v499_v0 = vadd.f32 %v4492_v31, %v6972_v18  ;;  %v514_v18 = vadd.f32 %v4492_v31, %v6984_v12 }
 0x1b7   : > { %v1340_v34 = vpop.f32.mrb[4].mxu0 }
 0x1b8   : > { %v1478_v25 = vand.u32 4294901760, %v7055_v7  ;;  %v7058_v51 = vand.u32 4294901760, %v1373_v19  ;;  %v5456_v39 = vadd.f32 %v1340_v34, %v469_v32  ;;  %v1342_v22 = vpop.f32.mrb[5].mxu0 }
 0x1ba   : > { %v1479_v17 = vsub.f32 %v7055_v7, %v1478_v25  ;;  %v7065_v56 = vsub.f32 %v1373_v19, %v7058_v51  ;;  %v1374_v4 = vmax.f32 %v5456_v39, 0.0 }
 0x1bb   : > { %v1347_v44 = vpop.f32.mrb[6].mxu0 }
 0x1bc   : > { %v1480_v30 = vand.u32 4294901760, %v1479_v17  ;;  %v7068_v33 = vand.u32 4294901760, %v1374_v4  ;;  %v5458_v13 = vadd.f32 %v1347_v44, %v484_v3  ;;  %v1349_v45 = vpop.f32.mrb[7].mxu0  ;;  %v1488_v34 = vand.u32 4294901760, %v7065_v56 }
 0x1be   : > { %v7072_v32 = vsub.f32 %v1374_v4, %v7068_v33  ;;  %v1375_v61 = vmax.f32 %v5458_v13, 0.0  ;;  %4678 = vmatmul.mubr.f32.vlgmr.msra.gmra.mrb[14].mxu1 %v1480_v30  ;;  %v1489_v19 = vsub.f32 %v7065_v56, %v1488_v34 }
 0x1bf   : > { %5151 = vmatpush3.bf16.msra.mxu1 %v6946_v6  ;;  %v1354_v39 = vpop.f32.mrb[8].mxu0  ;;  %4680 = vmatprep.mubr.msk.f32.mxu1 %vm5959_vm1, %v8487_v46 }
 0x1c0   : > { %v7081_v45 = vand.u32 4294901760, %v1375_v61  ;;  %v5460_v22 = vadd.f32 %v1354_v39, %v499_v0  ;;  %v1356_v3 = vpop.f32.mrb[9].mxu0  ;;  %5152 = vmatprep.subr.bf16.mxu1 %v8482_v50  ;;  %v1490_v17 = vand.u32 4294901760, %v1489_v19  ;;  %v1498_v4 = vand.u32 4294901760, %v7072_v32 }
 0x1c1   : > { %v529_v0 = vadd.f32 %v4492_v31, %v6996_v63 }
 0x1c2   : > { %v7086_v44 = vsub.f32 %v1375_v61, %v7081_v45  ;;  %v1376_v30 = vmax.f32 %v5460_v22, 0.0  ;;  %4681 = vmatmul.mubr.f32.gmra.mrb[16].mxu1 %v1490_v17  ;;  %v1499_v6 = vsub.f32 %v7072_v32, %v1498_v4 }
 0x1c3   : > { %5154 = vmatpush3.bf16.msra.mxu1 %v6964_v58  ;;  %v1361_v12 = vpop.f32.mrb[10].mxu0  ;;  %4683 = vmatprep.mubr.msk.f32.mxu1 %vm5959_vm1, %v8487_v46 }
 0x1c4   : > { %v7095_v13 = vand.u32 4294901760, %v1376_v30  ;;  %v5462_v19 = vadd.f32 %v1361_v12, %v514_v18  ;;  %v1363_v39 = vpop.f32.mrb[11].mxu0  ;;  %5155 = vmatprep.subr.bf16.mxu1 %v8482_v50  ;;  %v1500_v61 = vand.u32 4294901760, %v1499_v6  ;;  %v1508_v22 = vand.u32 4294901760, %v7086_v44 }
 0x1c6   : > { %v7100_v3 = vsub.f32 %v1376_v30, %v7095_v13  ;;  %v1377_v17 = vmax.f32 %v5462_v19, 0.0  ;;  %4684 = vmatmul.mubr.f32.gmra.mrb[18].mxu1 %v1500_v61  ;;  %v1509_v58 = vsub.f32 %v7086_v44, %v1508_v22 }
 0x1c7   : > { %5157 = vmatpush3.bf16.msra.mxu1 %v6976_v40  ;;  %v1368_v63 = vpop.f32.mrb[12].mxu0  ;;  %4686 = vmatprep.mubr.msk.f32.mxu1 %vm5959_vm1, %v8487_v46 }
 0x1c8   : > { %v7108_v31 = vand.u32 4294901760, %v1377_v17  ;;  %v5464_v18 = vadd.f32 %v1368_v63, %v529_v0  ;;  %v1370_v6 = vpop.f32.mrb[13].mxu0  ;;  %5158 = vmatprep.subr.bf16.mxu1 %v8482_v50  ;;  %v1510_v30 = vand.u32 4294901760, %v1509_v58  ;;  %v1518_v12 = vand.u32 4294901760, %v7100_v3 }
 0x1ca   : > { %v7113_v19 = vsub.f32 %v1377_v17, %v7108_v31  ;;  %v1378_v39 = vmax.f32 %v5464_v18, 0.0  ;;  %4687 = vmatmul.mubr.f32.gmra.mrb[20].mxu1 %v1510_v30  ;;  %v1519_v40 = vsub.f32 %v7100_v3, %v1518_v12  ;;  %v7376_v30 = vld [vmem:[%s8306_s4] sm:$0xff] }
 0x1cb   : > { %5160 = vmatpush3.bf16.msra.mxu1 %v6988_v59  ;;  %4689 = vmatprep.mubr.msk.f32.mxu1 %vm5959_vm1, %v8487_v46 }
 0x1cc   : > { %v7121_v0 = vand.u32 4294901760, %v1378_v39  ;;  %5161 = vmatprep.subr.bf16.mxu1 %v8482_v50  ;;  %v1520_v61 = vand.u32 4294901760, %v1519_v40  ;;  %v1528_v58 = vand.u32 4294901760, %v7113_v19 }
 0x1ce   : > { %v7126_v17 = vsub.f32 %v1378_v39, %v7121_v0  ;;  %4690 = vmatmul.mubr.f32.gmra.mrb[22].mxu1 %v1520_v61  ;;  %v1529_v63 = vsub.f32 %v7113_v19, %v1528_v58 }
 0x1cf   : > { %5163 = vmatpush3.bf16.msra.mxu1 %v7000_v55  ;;  %4692 = vmatprep.mubr.msk.f32.mxu1 %vm5959_vm1, %v8487_v46 }
 0x1d0   : > { %5164 = vmatprep.subr.bf16.mxu1 %v8482_v50  ;;  %v1530_v59 = vand.u32 4294901760, %v1529_v63  ;;  %v1538_v18 = vand.u32 4294901760, %v7126_v17 }
 0x1d2   : > { %4693 = vmatmul.mubr.f32.gmra.mrb[24].mxu1 %v1530_v59  ;;  %v1539_v6 = vsub.f32 %v7126_v17, %v1538_v18 }
 0x1d3   : > { %5166 = vmatpush3.bf16.msra.mxu1 %v7010_v5  ;;  %4695 = vmatprep.mubr.msk.f32.mxu1 %vm5959_vm1, %v8487_v46  ;;  %v8515_v5 = vpack.c.bf16 %v6956_v27, %v6954_v35 }
 0x1d4   : > { %5167 = vmatprep.subr.bf16.mxu1 %v8482_v50  ;;  %v1540_v55 = vand.u32 4294901760, %v1539_v6 }
 0x1d6   : > { %4696 = vmatmul.mubr.f32.gmra.mrb[26].mxu1 %v1540_v55 }
 0x1d7   : > { %5169 = vmatpush3.bf16.msra.mxu1 %v7020_v37  ;;  %4730 = vmatprep.mubr.msk.f32.mxu1 %vm5959_vm1, %v8487_v46  ;;  %v8517_v37 = vand.u32 4294901760, %v6735_v21  ;;  %v8520_v21 = vand.u32 4294901760, %v6745_v20  ;;  %v8525_v20 = vand.u32 4294901760, %v6842_v49  ;;  %v8529_v49 = vand.u32 4294901760, %v6944_v1 }
 0x1d8   : > { %5170 = vmatprep.subr.bf16.mxu1 %v8482_v50 }
 0x1db   : > { %5172 = vmatpush3.bf16.msra.mxu1 %v7028_v47  ;;  %v8514_v47 = vpack.c.bf16 %v6944_v1, %v6942_v38 }
 0x1dc   : > { %5173 = vmatprep.subr.bf16.mxu1 %v8482_v50 }
 0x1de   : > { %4731 = vmatmul.mubr.f32.vlgmr.msra.gmra.mrb[14].mxu1 %v7051_v8 }
 0x1df   : > { %5175 = vmatpush3.bf16.msra.mxu1 %v5174_v9  ;;  %4733 = vmatprep.mubr.msk.f32.mxu1 %vm5959_vm1, %v8487_v46 }
 0x1e0   : > { %5176 = vmatprep.subr.bf16.mxu1 %v8482_v50 }
 0x1e2   : > { %4734 = vmatmul.mubr.f32.gmra.mrb[16].mxu1 %v7058_v51 }
 0x1e3   : > { %5178 = vmatpush3.bf16.msra.mxu1 %v5177_v57  ;;  %4736 = vmatprep.mubr.msk.f32.mxu1 %vm5959_vm1, %v8487_v46  ;;  %v8518_v57 = vand.u32 4294901760, %v6738_v62  ;;  %v8522_v62 = vand.u32 4294901760, %v6749_v15  ;;  %v8526_v15 = vand.u32 4294901760, %v6938_v23  ;;  %v8530_v23 = vand.u32 4294901760, %v6954_v35 }
 0x1e4   : > { %5179 = vmatprep.subr.bf16.mxu1 %v8482_v50 }
 0x1e6   : > { %4737 = vmatmul.mubr.f32.gmra.mrb[18].mxu1 %v7068_v33 }
 0x1e7   : > { %5181 = vmatpush3.bf16.msra.mxu1 %v5180_v54  ;;  %4739 = vmatprep.mubr.msk.f32.mxu1 %vm5959_vm1, %v8487_v46  ;;  %v8519_v54 = vand.u32 4294901760, %v6740_v26  ;;  %v8523_v26 = vand.u32 4294901760, %v6753_v53  ;;  %v8527_v53 = vand.u32 4294901760, %v6940_v52  ;;  %v8531_v52 = vand.u32 4294901760, %v6956_v27 }
 0x1e8   : > { %5182 = vmatprep.subr.bf16.mxu1 %v8482_v50 }
 0x1ea   : > { %4740 = vmatmul.mubr.f32.gmra.mrb[20].mxu1 %v7081_v45 }
 0x1eb   : > { %5184 = vmatpush3.bf16.msra.mxu1 %v5183_v11  ;;  %4742 = vmatprep.mubr.msk.f32.mxu1 %vm5959_vm1, %v8487_v46  ;;  %v5225_v11 = vpack.c.bf16 %v8519_v54, %v8518_v57 }
 0x1ec   : > { %5185 = vmatprep.subr.bf16.mxu1 %v8482_v50 }
 0x1ee   : > { %4743 = vmatmul.mubr.f32.gmra.mrb[22].mxu1 %v7095_v13 }
 0x1ef   : > { %5187 = vmatpush3.bf16.msra.mxu1 %v5186_v24  ;;  %4745 = vmatprep.mubr.msk.f32.mxu1 %vm5959_vm1, %v8487_v46  ;;  %v8516_v24 = vand.u32 4294901760, %v6733_v14  ;;  %v8521_v14 = vand.u32 4294901760, %v6747_v29  ;;  %v8524_v29 = vand.u32 4294901760, %v6840_v2  ;;  %v8528_v2 = vand.u32 4294901760, %v6942_v38 }
 0x1f0   : > { %5188 = vmatprep.subr.bf16.mxu1 %v8482_v50 }
 0x1f1   : > { %v5222_v9 = vpack.c.bf16 %v8517_v37, %v8516_v24 }
 0x1f2   : > { %4746 = vmatmul.mubr.f32.gmra.mrb[24].mxu1 %v7108_v31 }
 0x1f3   : > { %5190 = vmatpush3.bf16.msra.mxu1 %v5189_v48  ;;  %4748 = vmatprep.mubr.msk.f32.mxu1 %vm5959_vm1, %v8487_v46  ;;  %v5231_v48 = vpack.c.bf16 %v8523_v26, %v8522_v62 }
 0x1f4   : > { %5191 = vmatprep.subr.bf16.mxu1 %v8482_v50 }
 0x1f6   : > { %4749 = vmatmul.mubr.f32.gmra.mrb[26].mxu1 %v7121_v0 }
 0x1f7   : > { %5193 = vmatpush3.bf16.msra.mxu1 %v8514_v47  ;;  %4783 = vmatprep.mubr.msk.f32.mxu1 %vm5959_vm1, %v8487_v46 }
 0x1f8   : > { %5194 = vmatprep.subr.bf16.mxu1 %v8482_v50 }
 0x1fb   : > { %5196 = vmatpush3.bf16.msra.mxu1 %v8515_v5 }
 0x1fc   : > { %5197 = vmatprep.subr.bf16.mxu1 %v8482_v50 }
 0x1fe   : > { %4784 = vmatmul.mubr.f32.vlgmr.msra.gmra.mrb[14].mxu1 %v7055_v7  ;;  %v5228_v7 = vpack.c.bf16 %v8521_v14, %v8520_v21 }
 0x1ff   : > { %5199 = vmatpush3.bf16.msra.mxu1 %v6731_v41  ;;  %4786 = vmatprep.mubr.msk.f32.mxu1 %vm5959_vm1, %v8487_v46 }
 0x200   : > { %5200 = vmatprep.subr.bf16.mxu1 %v8482_v50 }
 0x202   : > { %4787 = vmatmul.mubr.f32.gmra.mrb[16].mxu1 %v7065_v56  ;;  %v5237_v56 = vpack.c.bf16 %v8527_v53, %v8526_v15 }
 0x203   : > { %5202 = vmatpush3.bf16.msra.mxu1 %v6743_v43  ;;  %4789 = vmatprep.mubr.msk.f32.mxu1 %vm5959_vm1, %v8487_v46 }
 0x204   : > { %5203 = vmatprep.subr.bf16.mxu1 %v8482_v50 }
 0x206   : > { %4790 = vmatmul.mubr.f32.gmra.mrb[18].mxu1 %v7072_v32  ;;  %v5243_v32 = vpack.c.bf16 %v8531_v52, %v8530_v23 }
 0x207   : > { %5205 = vmatpush3.bf16.msra.mxu1 %v6759_v16  ;;  %4792 = vmatprep.mubr.msk.f32.mxu1 %vm5959_vm1, %v8487_v46 }
 0x208   : > { %5206 = vmatprep.subr.bf16.mxu1 %v8482_v50 }
 0x20a   : > { %4793 = vmatmul.mubr.f32.gmra.mrb[20].mxu1 %v7086_v44 }
 0x20b   : > { %5208 = vmatpush3.bf16.msra.mxu1 %v6767_v42  ;;  %4795 = vmatprep.mubr.msk.f32.mxu1 %vm5959_vm1, %v8487_v46 }
 0x20c   : > { %5209 = vmatprep.subr.bf16.mxu1 %v8482_v50 }
 0x20e   : > { %4796 = vmatmul.mubr.f32.gmra.mrb[22].mxu1 %v7100_v3 }
 0x20f   : > { %5211 = vmatpush3.bf16.msra.mxu1 %v6838_v28  ;;  %4798 = vmatprep.mubr.msk.f32.mxu1 %vm5959_vm1, %v8487_v46 }
 0x210   : > { %5212 = vmatprep.subr.bf16.mxu1 %v8482_v50 }
 0x212   : > { %4799 = vmatmul.mubr.f32.gmra.mrb[24].mxu1 %v7113_v19  ;;  %v7381_v19 = vand.u32 4294901760, %v7376_v30 }
 0x213   : > { %5214 = vmatpush3.bf16.msra.mxu1 %v6898_v10  ;;  %4801 = vmatprep.mubr.msk.f32.mxu1 %vm5959_vm1, %v8487_v46 }
 0x214   : > { %5215 = vmatprep.subr.bf16.mxu1 %v8482_v50 }
 0x216   : > { %4802 = vmatmul.mubr.f32.gmra.mrb[26].mxu1 %v7126_v17 }
 0x217   : > { %5217 = vmatpush3.bf16.msra.mxu1 %v6910_v36  ;;  %4836 = vmatprep.mubr.msk.f32.mxu1 %vm5959_vm1, %v8487_v46 }
 0x218   : > { %5218 = vmatprep.subr.bf16.mxu1 %v8482_v50 }
 0x21b   : > { %5220 = vmatpush3.bf16.msra.mxu1 %v6924_v60 }
 0x21c   : > { %5221 = vmatprep.subr.bf16.mxu1 %v8482_v50 }
 0x21e   : > { %4837 = vmatmul.mubr.f32.vlgmr.msra.gmra.mrb[14].mxu1 %v1478_v25  ;;  %v5234_v25 = vpack.c.bf16 %v8525_v20, %v8524_v29 }
 0x21f   : > { %5223 = vmatpush3.bf16.msra.mxu1 %v5222_v9  ;;  %4839 = vmatprep.mubr.msk.f32.mxu1 %vm5959_vm1, %v8487_v46 }
 0x220   : > { %5224 = vmatprep.subr.bf16.mxu1 %v8482_v50 }
 0x222   : > { %4840 = vmatmul.mubr.f32.gmra.mrb[16].mxu1 %v1488_v34  ;;  %v5240_v34 = vpack.c.bf16 %v8529_v49, %v8528_v2 }
 0x223   : > { %5226 = vmatpush3.bf16.msra.mxu1 %v5225_v11  ;;  %4842 = vmatprep.mubr.msk.f32.mxu1 %vm5959_vm1, %v8487_v46 }
 0x224   : > { %5227 = vmatprep.subr.bf16.mxu1 %v8482_v50 }
 0x226   : > { %4843 = vmatmul.mubr.f32.gmra.mrb[18].mxu1 %v1498_v4 }
 0x227   : > { %5229 = vmatpush3.bf16.msra.mxu1 %v5228_v7  ;;  %4845 = vmatprep.mubr.msk.f32.mxu1 %vm5959_vm1, %v8487_v46 }
 0x228   : > { %5230 = vmatprep.subr.bf16.mxu1 %v8482_v50 }
 0x22a   : > { %4846 = vmatmul.mubr.f32.gmra.mrb[20].mxu1 %v1508_v22 }
 0x22b   : > { %5232 = vmatpush3.bf16.msra.mxu1 %v5231_v48  ;;  %4848 = vmatprep.mubr.msk.f32.mxu1 %vm5959_vm1, %v8487_v46 }
 0x22c   : > { %5233 = vmatprep.subr.bf16.mxu1 %v8482_v50 }
 0x22e   : > { %4849 = vmatmul.mubr.f32.gmra.mrb[22].mxu1 %v1518_v12 }
 0x22f   : > { %5235 = vmatpush3.bf16.msra.mxu1 %v5234_v25  ;;  %4851 = vmatprep.mubr.msk.f32.mxu1 %vm5959_vm1, %v8487_v46 }
 0x230   : > { %5236 = vmatprep.subr.bf16.mxu1 %v8482_v50 }
 0x232   : > { %4852 = vmatmul.mubr.f32.gmra.mrb[24].mxu1 %v1528_v58 }
 0x233   : > { %5238 = vmatpush3.bf16.msra.mxu1 %v5237_v56  ;;  %4854 = vmatprep.mubr.msk.f32.mxu1 %vm5959_vm1, %v8487_v46 }
 0x234   : > { %5239 = vmatprep.subr.bf16.mxu1 %v8482_v50 }
 0x236   : > { %4855 = vmatmul.mubr.f32.gmra.mrb[26].mxu1 %v1538_v18 }
 0x237   : > { %5241 = vmatpush3.bf16.msra.mxu1 %v5240_v34  ;;  %4889 = vmatprep.mubr.msk.f32.mxu1 %vm5959_vm1, %v8487_v46 }
 0x238   : > { %5242 = vmatprep.subr.bf16.mxu1 %v8482_v50 }
 0x23b   : > { %5244 = vmatpush3.bf16.msra.mxu1 %v5243_v32 }
 0x23c   : > { %5245 = vmatprep.subr.bf16.mxu1 %v8482_v50 }
 0x23e   : > { %4890 = vmatmul.mubr.f32.vlgmr.msra.gmra.mrb[14].mxu1 %v7051_v8 }
 0x23f   : > { %5247 = vmatpush3.bf16.msra.mxu1 %v6731_v41  ;;  %4892 = vmatprep.mubr.msk.f32.mxu1 %vm5959_vm1, %v8487_v46 }
 0x240   : > { %5248 = vmatprep.subr.bf16.mxu1 %v8482_v50 }
 0x242   : > { %4893 = vmatmul.mubr.f32.gmra.mrb[16].mxu1 %v7058_v51 }
 0x243   : > { %5250 = vmatpush3.bf16.msra.mxu1 %v6743_v43  ;;  %4895 = vmatprep.mubr.msk.f32.mxu1 %vm5959_vm1, %v8487_v46 }
 0x244   : > { %5251 = vmatprep.subr.bf16.mxu1 %v8482_v50 }
 0x246   : > { %4896 = vmatmul.mubr.f32.gmra.mrb[18].mxu1 %v7068_v33 }
 0x247   : > { %5253 = vmatpush3.bf16.msra.mxu1 %v6759_v16  ;;  %4898 = vmatprep.mubr.msk.f32.mxu1 %vm5959_vm1, %v8487_v46 }
 0x248   : > { %5254 = vmatprep.subr.bf16.mxu1 %v8482_v50 }
 0x24a   : > { %4899 = vmatmul.mubr.f32.gmra.mrb[20].mxu1 %v7081_v45 }
 0x24b   : > { %5256 = vmatpush3.bf16.msra.mxu1 %v6767_v42  ;;  %4901 = vmatprep.mubr.msk.f32.mxu1 %vm5959_vm1, %v8487_v46 }
 0x24c   : > { %5257 = vmatprep.subr.bf16.mxu1 %v8482_v50 }
 0x24e   : > { %4902 = vmatmul.mubr.f32.gmra.mrb[22].mxu1 %v7095_v13 }
 0x24f   : > { %5259 = vmatpush3.bf16.msra.mxu1 %v6838_v28  ;;  %4904 = vmatprep.mubr.msk.f32.mxu1 %vm5959_vm1, %v8487_v46 }
 0x250   : > { %5260 = vmatprep.subr.bf16.mxu1 %v8482_v50 }
 0x252   : > { %4905 = vmatmul.mubr.f32.gmra.mrb[24].mxu1 %v7108_v31 }
 0x253   : > { %5262 = vmatpush3.bf16.msra.mxu1 %v6898_v10  ;;  %4907 = vmatprep.mubr.msk.f32.mxu1 %vm5959_vm1, %v8487_v46 }
 0x254   : > { %5263 = vmatprep.subr.bf16.mxu1 %v8482_v50 }
 0x256   : > { %4908 = vmatmul.mubr.f32.gmra.mrb[26].mxu1 %v7121_v0 }
 0x257   : > { %5265 = vmatpush3.bf16.msra.mxu1 %v6910_v36  ;;  %4942 = vmatprep.mubr.msk.f32.mxu1 %vm5959_vm1, %v8487_v46 }
 0x258   : > { %5266 = vmatprep.subr.bf16.mxu1 %v8482_v50 }
 0x25b   : > { %5268 = vmatpush3.bf16.msra.mxu1 %v6924_v60 }
 0x25e   : > { %4943 = vmatmul.mubr.f32.vlgmr.msra.gmra.mrb[14].mxu1 %v7051_v8 }
 0x25f   : > { %4945 = vmatprep.mubr.msk.f32.mxu1 %vm5959_vm1, %v8487_v46 }
 0x262   : > { %4946 = vmatmul.mubr.f32.gmra.mrb[16].mxu1 %v7058_v51 }
 0x263   : > { %4948 = vmatprep.mubr.msk.f32.mxu1 %vm5959_vm1, %v8487_v46 }
 0x266   : > { %4949 = vmatmul.mubr.f32.gmra.mrb[18].mxu1 %v7068_v33 }
 0x267   : > { %4951 = vmatprep.mubr.msk.f32.mxu1 %vm5959_vm1, %v8487_v46 }
 0x26a   : > { %4952 = vmatmul.mubr.f32.gmra.mrb[20].mxu1 %v7081_v45 }
 0x26b   : > { %4954 = vmatprep.mubr.msk.f32.mxu1 %vm5959_vm1, %v8487_v46 }
 0x26e   : > { %4955 = vmatmul.mubr.f32.gmra.mrb[22].mxu1 %v7095_v13 }
 0x26f   : > { %4957 = vmatprep.mubr.msk.f32.mxu1 %vm5959_vm1, %v8487_v46 }
 0x272   : > { %4958 = vmatmul.mubr.f32.gmra.mrb[24].mxu1 %v7108_v31  ;;  %v2373_v31 = vld [vmem:[%s8306_s4 + $0x8] sm:$0xff] }
 0x273   : > { %4960 = vmatprep.mubr.msk.f32.mxu1 %vm5959_vm1, %v8487_v46  ;;  %v7378_v12 = vand.u32 4294901760, %v2373_v31 }
 0x275   : > { %2396 = vmatprep.subr.mxu1 %v7378_v12  ;;  %v7402_v52 = vsub.f32 %v2373_v31, %v7378_v12 }
 0x276   : > { %4961 = vmatmul.mubr.f32.gmra.mrb[26].mxu1 %v7121_v0 }
 0x277   : > { %2461 = vmatprep.mubr.f32.mxu1 %v8487_v46  ;;  %2398 = vmatpush1.msra.mxu1 %v7381_v19  ;;  %v2541_v32 = vand.u32 4294901760, %v7402_v52 }
 0x331   : > { %v2254_v43 = vpop.f32.mrb[14].mxu1 }
 0x332   : > { %v4944_v41 = vpop.f32.mrb[15].mxu1  ;;  %v2295_v16 = vsel %vm2294_vm2, %v2254_v43, -inf }
 0x333   : > { %2296 = vmax.xlane.f32.xlu0 %v2295_v16 }
 0x335   : > { %v2260_v42 = vpop.f32.mrb[16].mxu1 }
 0x336   : > { %v4947_v28 = vpop.f32.mrb[17].mxu1  ;;  %v2298_v10 = vsel %vm2294_vm2, %v2260_v42, -inf }
 0x337   : > { %2299 = vmax.xlane.f32.xlu0 %v2298_v10  ;;  %v7410_v10 = vsub.f32 %v7376_v30, %v7381_v19 }
 0x339   : > { %v2266_v36 = vpop.f32.mrb[18].mxu1 }
 0x33a   : > { %v4950_v60 = vpop.f32.mrb[19].mxu1  ;;  %v2301_v38 = vsel %vm2294_vm2, %v2266_v36, -inf }
 0x33b   : > { %2302 = vmax.xlane.f32.xlu1 %v2301_v38 }
 0x33d   : > { %v2272_v1 = vpop.f32.mrb[20].mxu1 }
 0x33e   : > { %v4953_v35 = vpop.f32.mrb[21].mxu1  ;;  %v2304_v27 = vsel %vm2294_vm2, %v2272_v1, -inf }
 0x33f   : > { %2305 = vmax.xlane.f32.xlu1 %v2304_v27  ;;  %v2547_v35 = vand.u32 4294901760, %v7410_v10 }
 0x341   : > { %v2278_v8 = vpop.f32.mrb[22].mxu1 }
 0x342   : > { %v4956_v51 = vpop.f32.mrb[23].mxu1  ;;  %v2307_v33 = vsel %vm2294_vm2, %v2278_v8, -inf }
 0x343   : > { %2308 = vmax.xlane.f32.xlu0 %v2307_v33 }
 0x345   : > { %v2284_v45 = vpop.f32.mrb[24].mxu1 }
 0x346   : > { %v4959_v4 = vpop.f32.mrb[25].mxu1  ;;  %v2310_v44 = vsel %vm2294_vm2, %v2284_v45, -inf }
 0x347   : > { %2311 = vmax.xlane.f32.xlu1 %v2310_v44  ;;  %v2548_v4 = vsub.f32 %v7410_v10, %v2547_v35 }
 0x349   : > { %v2290_v13 = vpop.f32.mrb[26].mxu1 }
 0x34a   : > { %v4962_v22 = vpop.f32.mrb[27].mxu1  ;;  %v2313_v3 = vsel %vm2294_vm2, %v2290_v13, -inf }
 0x34b   : > { %2314 = vmax.xlane.f32.xlu0 %v2313_v3 }
 0x3c0   : > { %v2297_v39 = vpop.xlane.xlu0 %2296 }
 0x3c1   : > { %v2316_v40 = vsub.f32 %v2254_v43, %v2297_v39  ;;  %v2542_v43 = vsub.f32 %v7402_v52, %v2541_v32 }
 0x3c3   : > { %v2323_v0 = vmul.f32 1.442695, %v2316_v40  ;;  %v2543_v41 = vand.u32 4294901760, %v2542_v43 }
 0x3c4   : > { %v2300_v61 = vpop.xlane.xlu0 %2299 }
 0x3c5   : > { %5823 = vpow2.f32 %v2323_v0  ;;  %v2317_v58 = vsub.f32 %v2260_v42, %v2300_v61  ;;  %2544 = vmatprep.subr.mxu1 %v2543_v41  ;;  %v2549_v0 = vand.u32 4294901760, %v2548_v4  ;;  %v3169_v4 = vld [vmem:[%s8307_s5 + $0x8] sm:$0xff] }
 0x3c7   : > { %v2325_v17 = vmul.f32 1.442695, %v2317_v58 }
 0x3c8   : > { %v2303_v63 = vpop.xlane.xlu1 %2302 }
 0x3c9   : > { %5825 = vpow2.f32 %v2325_v17  ;;  %v2318_v59 = vsub.f32 %v2266_v36, %v2303_v63 }
 0x3cb   : > { %v2327_v18 = vmul.f32 1.442695, %v2318_v59 }
 0x3cc   : > { %v2306_v6 = vpop.xlane.xlu1 %2305 }
 0x3cd   : > { %5827 = vpow2.f32 %v2327_v18  ;;  %v2319_v55 = vsub.f32 %v2272_v1, %v2306_v6 }
 0x3cf   : > { %v5824_v47 = vpop.eup %5823  ;;  %v2329_v5 = vmul.f32 1.442695, %v2319_v55 }
 0x3d0   : > { %v2309_v24 = vpop.xlane.xlu0 %2308  ;;  %v2337_v37 = vsel %vm2294_vm2, %v5824_v47, 0.0 }
 0x3d1   : > { %5829 = vpow2.f32 %v2329_v5  ;;  %v2320_v9 = vsub.f32 %v2278_v8, %v2309_v24  ;;  %2338 = vadd.xlane.f32.xlu1 %v2337_v37 }
 0x3d3   : > { %v5826_v57 = vpop.eup %5825  ;;  %v2331_v54 = vmul.f32 1.442695, %v2320_v9 }
 0x3d4   : > { %v2312_v11 = vpop.xlane.xlu1 %2311  ;;  %v2340_v21 = vsel %vm2294_vm2, %v5826_v57, 0.0 }
 0x3d5   : > { %5831 = vpow2.f32 %v2331_v54  ;;  %v2321_v14 = vsub.f32 %v2284_v45, %v2312_v11  ;;  %2341 = vadd.xlane.f32.xlu0 %v2340_v21 }
 0x3d7   : > { %v5828_v7 = vpop.eup %5827  ;;  %v2333_v62 = vmul.f32 1.442695, %v2321_v14 }
 0x3d8   : > { %v2315_v26 = vpop.xlane.xlu0 %2314  ;;  %v2343_v48 = vsel %vm2294_vm2, %v5828_v7, 0.0 }
 0x3d9   : > { %5833 = vpow2.f32 %v2333_v62  ;;  %v2322_v29 = vsub.f32 %v2290_v13, %v2315_v26  ;;  %2344 = vadd.xlane.f32.xlu1 %v2343_v48 }
 0x3db   : > { %v5830_v20 = vpop.eup %5829  ;;  %v2335_v25 = vmul.f32 1.442695, %v2322_v29 }
 0x3dc   : > { %v2346_v15 = vsel %vm2294_vm2, %v5830_v20, 0.0 }
 0x3dd   : > { %5835 = vpow2.f32 %v2335_v25  ;;  %2347 = vadd.xlane.f32.xlu0 %v2346_v15 }
 0x3df   : > { %v7389_v53 = vpop.eup %5831 }
 0x3e0   : > { %v2349_v56 = vsel %vm2294_vm2, %v7389_v53, 0.0 }
 0x3e1   : > { %2350 = vadd.xlane.f32.xlu1 %v2349_v56 }
 0x3e3   : > { %v7393_v2 = vpop.eup %5833 }
 0x3e4   : > { %v2352_v49 = vsel %vm2294_vm2, %v7393_v2, 0.0 }
 0x3e5   : > { %2353 = vadd.xlane.f32.xlu0 %v2352_v49 }
 0x3e7   : > { %v7397_v34 = vpop.eup %5835 }
 0x3e8   : > { %v2355_v23 = vsel %vm2294_vm2, %v7397_v34, 0.0 }
 0x3e9   : > { %2356 = vadd.xlane.f32.xlu1 %v2355_v23 }
 0x45e   : > { %v2339_v16 = vpop.xlane.xlu1 %2338 }
 0x45f   : > { %5837 = vrcp.f32 %v2339_v16 }
 0x462   : > { %v2342_v42 = vpop.xlane.xlu0 %2341 }
 0x463   : > { %5839 = vrcp.f32 %v2342_v42 }
 0x466   : > { %v2345_v28 = vpop.xlane.xlu1 %2344 }
 0x467   : > { %5841 = vrcp.f32 %v2345_v28 }
 0x469   : > { %v5838_v36 = vpop.eup %5837 }
 0x46a   : > { %v2365_v60 = vmul.f32 %v5838_v36, %v5824_v47  ;;  %v2348_v38 = vpop.xlane.xlu0 %2347 }
 0x46b   : > { %5843 = vrcp.f32 %v2348_v38 }
 0x46c   : > { %v2375_v1 = vsel %vm2294_vm2, %v2365_v60, 0 }
 0x46d   : > { %v5840_v27 = vpop.eup %5839  ;;  %v7414_v8 = vand.u32 4294901760, %v2375_v1 }
 0x46e   : > { %v2366_v51 = vmul.f32 %v5840_v27, %v5826_v57  ;;  %v2351_v33 = vpop.xlane.xlu1 %2350 }
 0x46f   : > { %v7417_v45 = vsub.f32 %v2375_v1, %v7414_v8  ;;  %5845 = vrcp.f32 %v2351_v33  ;;  %v3168_v33 = vld [vmem:[%s8307_s5] sm:$0xff] }
 0x470   : > { %v2378_v44 = vsel %vm2294_vm2, %v2366_v51, 0 }
 0x471   : > { %v5842_v13 = vpop.eup %5841  ;;  %v2464_v22 = vand.u32 4294901760, %v7417_v45  ;;  %v7424_v3 = vand.u32 4294901760, %v2378_v44 }
 0x472   : > { %v2367_v31 = vmul.f32 %v5842_v13, %v5828_v7  ;;  %v2354_v30 = vpop.xlane.xlu0 %2353  ;;  %v3209_v13 = vand.u32 4294901760, %v3168_v33 }
 0x473   : > { %5847 = vrcp.f32 %v2354_v30  ;;  %v2465_v39 = vsub.f32 %v7417_v45, %v2464_v22  ;;  %v7430_v40 = vsub.f32 %v2378_v44, %v7424_v3  ;;  %v3170_v44 = vld [vmem:[%s8307_s5 + $0x10] sm:$0xff]  ;;  %v3171_v30 = vld [vmem:[%s8307_s5 + $0x18] sm:$0xff] }
 0x474   : > { %v2381_v61 = vsel %vm2294_vm2, %v2367_v31, 0  ;;  %v3212_v31 = vand.u32 4294901760, %v3169_v4 }
 0x475   : > { %v5844_v58 = vpop.eup %5843  ;;  %v2466_v17 = vand.u32 4294901760, %v2465_v39  ;;  %v2475_v63 = vand.u32 4294901760, %v7430_v40  ;;  %v7434_v59 = vand.u32 4294901760, %v2381_v61  ;;  %v3215_v39 = vand.u32 4294901760, %v3170_v44 }
 0x476   : > { %v2368_v18 = vmul.f32 %v5844_v58, %v5830_v20  ;;  %v2357_v6 = vpop.xlane.xlu1 %2356  ;;  %v3218_v58 = vand.u32 4294901760, %v3171_v30 }
 0x477   : > { %5849 = vrcp.f32 %v2357_v6  ;;  %2467 = vmatmul.mubr.f32.vlgmr.msra.gmra.mrb[28].mxu1 %v2466_v17  ;;  %v2476_v55 = vsub.f32 %v7430_v40, %v2475_v63  ;;  %v7440_v47 = vsub.f32 %v2381_v61, %v7434_v59  ;;  %v3173_v61 = vld [vmem:[%s8307_s5 + $0x28] sm:$0xff]  ;;  %v3174_v6 = vld [vmem:[%s8307_s5 + $0x30] sm:$0xff] }
 0x478   : > { %2550 = vmatpush1.msra.mxu1 %v2549_v0  ;;  %2472 = vmatprep.mubr.f32.mxu1 %v8487_v46  ;;  %v2384_v5 = vsel %vm2294_vm2, %v2368_v18, 0  ;;  %v3172_v0 = vld [vmem:[%s8307_s5 + $0x20] sm:$0xff]  ;;  %v3224_v18 = vand.u32 4294901760, %v3173_v61 }
 0x479   : > { %v5846_v24 = vpop.eup %5845  ;;  %v2477_v37 = vand.u32 4294901760, %v2476_v55  ;;  %v2486_v9 = vand.u32 4294901760, %v7440_v47  ;;  %v7445_v57 = vand.u32 4294901760, %v2384_v5  ;;  %2665 = vmatprep.subr.mxu1 %v7402_v52  ;;  %v3221_v17 = vand.u32 4294901760, %v3172_v0  ;;  %v3175_v55 = vld [vmem:[%s8307_s5 + $0x38] sm:$0xff] }
 0x47a   : > { %v2369_v54 = vmul.f32 %v5846_v24, %v7389_v53  ;;  %v7532_v24 = vpack.c.bf16 %v3212_v31, %v3209_v13 }
 0x47b   : > { %2478 = vmatmul.mubr.f32.gmra.mrb[30].mxu1 %v2477_v37  ;;  %v2487_v11 = vsub.f32 %v7440_v47, %v2486_v9  ;;  %v7453_v21 = vsub.f32 %v2384_v5, %v7445_v57  ;;  %v3176_v5 = vld [vmem:[%s8307_s5 + $0x40] sm:$0xff]  ;;  %v7534_v37 = vsub.f32 %v3168_v33, %v3209_v13 }
 0x47c   : > { %2483 = vmatprep.mubr.f32.mxu1 %v8487_v46  ;;  %v2387_v14 = vsel %vm2294_vm2, %v2369_v54, 0  ;;  %v7536_v54 = vsub.f32 %v3169_v4, %v3212_v31  ;;  %5271 = vmatpush1.bf16.msra.mxu0 %v7532_v24 }
 0x47d   : > { %v5848_v7 = vpop.eup %5847  ;;  %v2488_v62 = vand.u32 4294901760, %v2487_v11  ;;  %v2497_v26 = vand.u32 4294901760, %v7453_v21  ;;  %v7458_v48 = vand.u32 4294901760, %v2387_v14  ;;  %v7538_v11 = vsub.f32 %v3170_v44, %v3215_v39  ;;  %5272 = vmatprep.subr.bf16.mxu0 %v8482_v50 }
 0x47e   : > { %v2370_v29 = vmul.f32 %v5848_v7, %v7393_v2  ;;  %v3178_v7 = vld [vmem:[%s8307_s5 + $0x50] sm:$0xff]  ;;  %v7574_v44 = vpack.c.bf16 %v3224_v18, %v3221_v17 }
 0x47f   : > { %2489 = vmatmul.mubr.f32.gmra.mrb[32].mxu1 %v2488_v62  ;;  %v2498_v20 = vsub.f32 %v7453_v21, %v2497_v26  ;;  %v7465_v25 = vsub.f32 %v2387_v14, %v7458_v48  ;;  %v3177_v14 = vld [vmem:[%s8307_s5 + $0x48] sm:$0xff]  ;;  %v7547_v62 = vpack.c.bf16 %v3218_v58, %v3215_v39 }
 0x480   : > { %2494 = vmatprep.mubr.f32.mxu1 %v8487_v46  ;;  %v2390_v15 = vsel %vm2294_vm2, %v2370_v29, 0  ;;  %v7549_v29 = vsub.f32 %v3171_v30, %v3218_v58  ;;  %8533 = vst [vmem:[#allocation4_spill] sm:$0xff] %v7574_v44 }
 0x481   : > { %v5850_v53 = vpop.eup %5849  ;;  %v2499_v56 = vand.u32 4294901760, %v2498_v20  ;;  %v2508_v49 = vand.u32 4294901760, %v7465_v25  ;;  %v7470_v23 = vand.u32 4294901760, %v2390_v15  ;;  %8532 = vst [vmem:[#allocation3_spill] sm:$0xff] %v7547_v62  ;;  %v7551_v20 = vsub.f32 %v3172_v0, %v3221_v17  ;;  %5274 = vmatpush1.bf16.msra.mxu0 %v7547_v62 }
 0x482   : > { %v2371_v2 = vmul.f32 %v5850_v53, %v7397_v34  ;;  %v7558_v53 = vsub.f32 %v3173_v61, %v3224_v18  ;;  %5275 = vmatprep.subr.bf16.mxu0 %v8482_v50  ;;  %v8406_v0 = vand.u32 4294901760, %v7538_v11  ;;  %v8405_v61 = vand.u32 4294901760, %v7549_v29 }
 0x483   : > { %2500 = vmatmul.mubr.f32.gmra.mrb[34].mxu1 %v2499_v56  ;;  %v2509_v43 = vsub.f32 %v7465_v25, %v2508_v49  ;;  %v7477_v41 = vsub.f32 %v2390_v15, %v7470_v23  ;;  %v3179_v15 = vld [vmem:[%s8307_s5 + $0x58] sm:$0xff]  ;;  %v3227_v56 = vand.u32 4294901760, %v3174_v6 }
 0x484   : > { %2505 = vmatprep.mubr.f32.mxu1 %v8487_v46  ;;  %v2393_v16 = vsel %vm2294_vm2, %v2371_v2, 0  ;;  %v3230_v2 = vand.u32 4294901760, %v3175_v55 }
 0x485   : > { %v2510_v42 = vand.u32 4294901760, %v2509_v43  ;;  %v2519_v28 = vand.u32 4294901760, %v7477_v41  ;;  %v7482_v36 = vand.u32 4294901760, %v2393_v16  ;;  %v3233_v43 = vand.u32 4294901760, %v3176_v5  ;;  %5277 = vmatpush1.bf16.msra.mxu0 %v7574_v44 }
 0x486   : > { %v7582_v31 = vpack.c.bf16 %v3230_v2, %v3227_v56  ;;  %5278 = vmatprep.subr.bf16.mxu0 %v8482_v50 }
 0x487   : > { %2511 = vmatmul.mubr.f32.gmra.mrb[36].mxu1 %v2510_v42  ;;  %v2520_v34 = vsub.f32 %v7477_v41, %v2519_v28  ;;  %v7488_v60 = vsub.f32 %v2393_v16, %v7482_v36  ;;  %v3236_v16 = vand.u32 4294901760, %v3177_v14  ;;  %v3239_v42 = vand.u32 4294901760, %v3178_v7 }
 0x488   : > { %2516 = vmatprep.mubr.f32.mxu1 %v8487_v46  ;;  %8534 = vst [vmem:[#allocation6_spill] sm:$0xff] %v7582_v31 }
 0x489   : > { %v2521_v38 = vand.u32 4294901760, %v2520_v34  ;;  %v2530_v1 = vand.u32 4294901760, %v7488_v60  ;;  %v7561_v34 = vsub.f32 %v3174_v6, %v3227_v56  ;;  %v7568_v33 = vsub.f32 %v3177_v14, %v3236_v16  ;;  %5280 = vmatpush1.bf16.msra.mxu0 %v7582_v31 }
 0x48a   : > { %v7570_v4 = vsub.f32 %v3178_v7, %v3239_v42  ;;  %5281 = vmatprep.subr.bf16.mxu0 %v8482_v50  ;;  %v7589_v30 = vpack.c.bf16 %v3236_v16, %v3233_v43  ;;  %v3415_v6 = vsub.f32 %v7538_v11, %v8406_v0  ;;  %v8404_v7 = vand.u32 4294901760, %v7551_v20 }
 0x48b   : > { %2522 = vmatmul.mubr.f32.gmra.mrb[38].mxu1 %v2521_v38  ;;  %v2531_v27 = vsub.f32 %v7488_v60, %v2530_v1  ;;  %v7563_v38 = vsub.f32 %v3175_v55, %v3230_v2  ;;  %v3422_v55 = vsub.f32 %v7549_v29, %v8405_v61  ;;  %v5853_v61 = vld [vmem:[%s6254_s10 + $0x10] sm:$0xff] }
 0x48c   : > { %2527 = vmatprep.mubr.f32.mxu1 %v8487_v46  ;;  %8535 = vst [vmem:[#allocation7_spill] sm:$0xff] %v7589_v30  ;;  %v3429_v2 = vsub.f32 %v7551_v20, %v8404_v7 }
 0x48d   : > { %v2532_v51 = vand.u32 4294901760, %v2531_v27  ;;  %v7565_v27 = vsub.f32 %v3176_v5, %v3233_v43  ;;  %5283 = vmatpush1.bf16.msra.mxu0 %v7589_v30  ;;  %v3416_v5 = vand.u32 4294901760, %v3415_v6  ;;  %v3423_v14 = vand.u32 4294901760, %v3422_v55 }
 0x48e   : > { %5284 = vmatprep.subr.bf16.mxu0 %v8482_v50  ;;  %v3430_v16 = vand.u32 4294901760, %v3429_v2 }
 0x48f   : > { %2533 = vmatmul.mubr.f32.gmra.mrb[40].mxu1 %v2532_v51  ;;  %v3242_v51 = vand.u32 4294901760, %v3179_v15  ;;  %v7758_v56 = vpack.c.bf16 %v3423_v14, %v3416_v5 }
 0x490   : > { %2613 = vmatprep.mubr.f32.mxu1 %v8487_v46 }
 0x491   : > { %v7576_v13 = vsub.f32 %v3179_v15, %v3242_v51  ;;  %v7597_v39 = vpack.c.bf16 %v3242_v51, %v3239_v42  ;;  %v8403_v15 = vand.u32 4294901760, %v7558_v53  ;;  %v8402_v51 = vand.u32 4294901760, %v7561_v34 }
 0x493   : > { %2615 = vmatmul.mubr.f32.vlgmr.msra.gmra.mrb[28].mxu1 %v7414_v8  ;;  %8536 = vst [vmem:[#allocation5_spill] sm:$0xff] %v7597_v39  ;;  %5286 = vmatpush1.bf16.msra.mxu0 %v7597_v39  ;;  %v3436_v43 = vsub.f32 %v7558_v53, %v8403_v15 }
 0x494   : > { %2668 = vmatpush1.msra.mxu1 %v7410_v10  ;;  %2620 = vmatprep.mubr.f32.mxu1 %v8487_v46 }
 0x495   : > { %2789 = vmatprep.subr.mxu1 %v7378_v12  ;;  %5287 = vmatprep.subr.bf16.mxu0 %v8482_v50  ;;  %v3437_v42 = vand.u32 4294901760, %v3436_v43 }
 0x497   : > { %2622 = vmatmul.mubr.f32.gmra.mrb[30].mxu1 %v7424_v3 }
 0x498   : > { %2627 = vmatprep.mubr.f32.mxu1 %v8487_v46 }
 0x49b   : > { %2629 = vmatmul.mubr.f32.gmra.mrb[32].mxu1 %v7434_v59 }
 0x49c   : > { %2634 = vmatprep.mubr.f32.mxu1 %v8487_v46 }
 0x49f   : > { %2636 = vmatmul.mubr.f32.gmra.mrb[34].mxu1 %v7445_v57 }
 0x4a0   : > { %2641 = vmatprep.mubr.f32.mxu1 %v8487_v46 }
 0x4a3   : > { %2643 = vmatmul.mubr.f32.gmra.mrb[36].mxu1 %v7458_v48 }
 0x4a4   : > { %2648 = vmatprep.mubr.f32.mxu1 %v8487_v46 }
 0x4a7   : > { %2650 = vmatmul.mubr.f32.gmra.mrb[38].mxu1 %v7470_v23 }
 0x4a8   : > { %2655 = vmatprep.mubr.f32.mxu1 %v8487_v46 }
 0x4ab   : > { %2657 = vmatmul.mubr.f32.gmra.mrb[40].mxu1 %v7482_v36 }
 0x4ac   : > { %2731 = vmatprep.mubr.f32.mxu1 %v8487_v46 }
 0x4af   : > { %2734 = vmatmul.mubr.f32.vlgmr.msra.gmra.mrb[28].mxu1 %v7417_v45 }
 0x4b0   : > { %2791 = vmatpush1.msra.mxu1 %v7381_v19  ;;  %2739 = vmatprep.mubr.f32.mxu1 %v8487_v46 }
 0x4b1   : > { %2921 = vmatprep.subr.mxu1 %v2541_v32 }
 0x4b3   : > { %2742 = vmatmul.mubr.f32.gmra.mrb[30].mxu1 %v7430_v40  ;;  %v3184_v40 = vld [vmem:[%s8307_s5 + $0x80] sm:$0xff] }
 0x4b4   : > { %2747 = vmatprep.mubr.f32.mxu1 %v8487_v46 }
 0x4b7   : > { %2750 = vmatmul.mubr.f32.gmra.mrb[32].mxu1 %v7440_v47 }
 0x4b8   : > { %2755 = vmatprep.mubr.f32.mxu1 %v8487_v46 }
 0x4bb   : > { %2758 = vmatmul.mubr.f32.gmra.mrb[34].mxu1 %v7453_v21  ;;  %v8407_v21 = vand.u32 4294901760, %v7536_v54 }
 0x4bc   : > { %2763 = vmatprep.mubr.f32.mxu1 %v8487_v46 }
 0x4bf   : > { %2766 = vmatmul.mubr.f32.gmra.mrb[36].mxu1 %v7465_v25 }
 0x4c0   : > { %2771 = vmatprep.mubr.f32.mxu1 %v8487_v46 }
 0x4c3   : > { %2774 = vmatmul.mubr.f32.gmra.mrb[38].mxu1 %v7477_v41 }
 0x4c4   : > { %2779 = vmatprep.mubr.f32.mxu1 %v8487_v46 }
 0x4c7   : > { %2782 = vmatmul.mubr.f32.gmra.mrb[40].mxu1 %v7488_v60 }
 0x4c8   : > { %2854 = vmatprep.mubr.f32.mxu1 %v8487_v46 }
 0x4cb   : > { %2858 = vmatmul.mubr.f32.vlgmr.msra.gmra.mrb[28].mxu1 %v2464_v22 }
 0x4cc   : > { %2925 = vmatpush1.msra.mxu1 %v2547_v35  ;;  %2863 = vmatprep.mubr.f32.mxu1 %v8487_v46  ;;  %v3182_v35 = vld [vmem:[%s8307_s5 + $0x70] sm:$0xff] }
 0x4cd   : > { %3039 = vmatprep.subr.mxu1 %v7378_v12  ;;  %v3180_v12 = vld [vmem:[%s8307_s5 + $0x60] sm:$0xff]  ;;  %v3251_v45 = vand.u32 4294901760, %v3182_v35 }
 0x4ce   : > { %v3245_v52 = vand.u32 4294901760, %v3180_v12 }
 0x4cf   : > { %2867 = vmatmul.mubr.f32.gmra.mrb[30].mxu1 %v2475_v63  ;;  %v3185_v63 = vld [vmem:[%s8307_s5 + $0x88] sm:$0xff]  ;;  %v7719_v25 = vsub.f32 %v3182_v35, %v3251_v45 }
 0x4d0   : > { %2872 = vmatprep.mubr.f32.mxu1 %v8487_v46  ;;  %v3260_v47 = vand.u32 4294901760, %v3185_v63 }
 0x4d2   : > { %v7745_v17 = vsub.f32 %v3185_v63, %v3260_v47 }
 0x4d3   : > { %2876 = vmatmul.mubr.f32.gmra.mrb[32].mxu1 %v2486_v9 }
 0x4d4   : > { %2881 = vmatprep.mubr.f32.mxu1 %v8487_v46 }
 0x4d7   : > { %2885 = vmatmul.mubr.f32.gmra.mrb[34].mxu1 %v2497_v26  ;;  %v7715_v26 = vsub.f32 %v3180_v12, %v3245_v52  ;;  %v8401_v12 = vand.u32 4294901760, %v7563_v38 }
 0x4d8   : > { %2890 = vmatprep.mubr.f32.mxu1 %v8487_v46 }
 0x4d9   : > { %v8396_v2 = vand.u32 4294901760, %v7715_v26 }
 0x4db   : > { %2894 = vmatmul.mubr.f32.gmra.mrb[36].mxu1 %v2508_v49 }
 0x4dc   : > { %2899 = vmatprep.mubr.f32.mxu1 %v8487_v46 }
 0x4df   : > { %2903 = vmatmul.mubr.f32.gmra.mrb[38].mxu1 %v2519_v28 }
 0x4e0   : > { %2908 = vmatprep.mubr.f32.mxu1 %v8487_v46 }
 0x4e3   : > { %2912 = vmatmul.mubr.f32.gmra.mrb[40].mxu1 %v2530_v1 }
 0x4e4   : > { %2988 = vmatprep.mubr.f32.mxu1 %v8487_v46 }
 0x4e7   : > { %2990 = vmatmul.mubr.f32.vlgmr.msra.gmra.mrb[28].mxu1 %v7414_v8 }
 0x4e8   : > { %3041 = vmatpush1.msra.mxu1 %v7381_v19  ;;  %2995 = vmatprep.mubr.f32.mxu1 %v8487_v46  ;;  %v3181_v19 = vld [vmem:[%s8307_s5 + $0x68] sm:$0xff] }
 0x4e9   : > { %5431 = vmatprep.subr.bf16.mxu1 %v8482_v50  ;;  %v3248_v32 = vand.u32 4294901760, %v3181_v19 }
 0x4eb   : > { %2997 = vmatmul.mubr.f32.gmra.mrb[30].mxu1 %v7424_v3  ;;  %v7685_v10 = vpack.c.bf16 %v3248_v32, %v3245_v52  ;;  %v3443_v52 = vsub.f32 %v7561_v34, %v8402_v51 }
 0x4ec   : > { %3002 = vmatprep.mubr.f32.mxu1 %v8487_v46 }
 0x4ed   : > { %8537 = vst [vmem:[#allocation8_spill] sm:$0xff] %v7685_v10  ;;  %5289 = vmatpush1.bf16.msra.mxu0 %v7685_v10  ;;  %v3444_v35 = vand.u32 4294901760, %v3443_v52 }
 0x4ee   : > { %5290 = vmatprep.subr.bf16.mxu0 %v8482_v50 }
 0x4ef   : > { %3004 = vmatmul.mubr.f32.gmra.mrb[32].mxu1 %v7434_v59 }
 0x4f0   : > { %3009 = vmatprep.mubr.f32.mxu1 %v8487_v46 }
 0x4f3   : > { %3011 = vmatmul.mubr.f32.gmra.mrb[34].mxu1 %v7445_v57 }
 0x4f4   : > { %3016 = vmatprep.mubr.f32.mxu1 %v8487_v46 }
 0x4f7   : > { %3018 = vmatmul.mubr.f32.gmra.mrb[36].mxu1 %v7458_v48 }
 0x4f8   : > { %3023 = vmatprep.mubr.f32.mxu1 %v8487_v46 }
 0x4fb   : > { %3025 = vmatmul.mubr.f32.gmra.mrb[38].mxu1 %v7470_v23 }
 0x4fc   : > { %3030 = vmatprep.mubr.f32.mxu1 %v8487_v46 }
 0x4ff   : > { %3032 = vmatmul.mubr.f32.gmra.mrb[40].mxu1 %v7482_v36 }
 0x500   : > { %3104 = vmatprep.mubr.f32.mxu1 %v8487_v46 }
 0x503   : > { %3106 = vmatmul.mubr.f32.vlgmr.msra.gmra.mrb[28].mxu1 %v7414_v8  ;;  %v3183_v8 = vld [vmem:[%s8307_s5 + $0x78] sm:$0xff] }
 0x504   : > { %3111 = vmatprep.mubr.f32.mxu1 %v8487_v46  ;;  %5441 = vmatpush1.bf16.msra.mxu1 %v7532_v24  ;;  %v3254_v22 = vand.u32 4294901760, %v3183_v8 }
 0x505   : > { %5432 = vmatprep.subr.bf16.mxu1 %v8482_v50 }
 0x506   : > { %v7721_v49 = vsub.f32 %v3183_v8, %v3254_v22 }
 0x507   : > { %3113 = vmatmul.mubr.f32.gmra.mrb[30].mxu1 %v7424_v3  ;;  %v7697_v3 = vpack.c.bf16 %v3254_v22, %v3251_v45  ;;  %v8400_v45 = vand.u32 4294901760, %v7565_v27  ;;  %v8399_v22 = vand.u32 4294901760, %v7568_v33 }
 0x508   : > { %3118 = vmatprep.mubr.f32.mxu1 %v8487_v46  ;;  %5442 = vmatpush1.bf16.msra.mxu1 %v7547_v62 }
 0x509   : > { %5433 = vmatprep.subr.bf16.mxu1 %v8482_v50  ;;  %8538 = vst [vmem:[#allocation9_spill] sm:$0xff] %v7697_v3  ;;  %5292 = vmatpush1.bf16.msra.mxu0 %v7697_v3  ;;  %v3457_v63 = vsub.f32 %v7565_v27, %v8400_v45 }
 0x50a   : > { %5293 = vmatprep.subr.bf16.mxu0 %v8482_v50 }
 0x50b   : > { %3120 = vmatmul.mubr.f32.gmra.mrb[32].mxu1 %v7434_v59  ;;  %v3257_v59 = vand.u32 4294901760, %v3184_v40 }
 0x50c   : > { %3125 = vmatprep.mubr.f32.mxu1 %v8487_v46  ;;  %5443 = vmatpush1.bf16.msra.mxu1 %v7574_v44 }
 0x50d   : > { %5434 = vmatprep.subr.bf16.mxu1 %v8482_v50  ;;  %v7709_v9 = vpack.c.bf16 %v3260_v47, %v3257_v59  ;;  %v7743_v58 = vsub.f32 %v3184_v40, %v3257_v59  ;;  %v3464_v59 = vsub.f32 %v7568_v33, %v8399_v22  ;;  %v3458_v47 = vand.u32 4294901760, %v3457_v63 }
 0x50e   : > { %v8391_v63 = vand.u32 4294901760, %v7721_v49 }
 0x50f   : > { %3127 = vmatmul.mubr.f32.gmra.mrb[34].mxu1 %v7445_v57  ;;  %8539 = vst [vmem:[#allocation10_spill] sm:$0xff] %v7709_v9  ;;  %v8408_v57 = vand.u32 4294901760, %v7534_v37  ;;  %5295 = vmatpush1.bf16.msra.mxu0 %v7709_v9 }
 0x510   : > { %3132 = vmatprep.mubr.f32.mxu1 %v8487_v46  ;;  %5444 = vmatpush1.bf16.msra.mxu1 %v7582_v31 }
 0x511   : > { %5435 = vmatprep.subr.bf16.mxu1 %v8482_v50  ;;  %3262 = vmatprep.subr.mxu0 %v8487_v46  ;;  %v3401_v28 = vsub.f32 %v7534_v37, %v8408_v57  ;;  %v5854_v57 = vld [vmem:[%s6254_s10 + $0x18] sm:$0xff] }
 0x513   : > { %3134 = vmatmul.mubr.f32.gmra.mrb[36].mxu1 %v7458_v48  ;;  %v7717_v48 = vsub.f32 %v3181_v19, %v3248_v32  ;;  %v3402_v60 = vand.u32 4294901760, %v3401_v28  ;;  %v7768_v19 = vpack.c.bf16 %v3437_v42, %v3430_v16  ;;  %v3450_v32 = vsub.f32 %v7563_v38, %v8401_v12 }
 0x514   : > { %3139 = vmatprep.mubr.f32.mxu1 %v8487_v46  ;;  %5445 = vmatpush1.bf16.msra.mxu1 %v7589_v30  ;;  %v3465_v28 = vand.u32 4294901760, %v3464_v59  ;;  %v3485_v42 = vsub.f32 %v7715_v26, %v8396_v2 }
 0x515   : > { %5436 = vmatprep.subr.bf16.mxu1 %v8482_v50  ;;  %v3451_v8 = vand.u32 4294901760, %v3450_v32  ;;  %v8395_v43 = vand.u32 4294901760, %v7717_v48 }
 0x516   : > { %v3486_v32 = vand.u32 4294901760, %v3485_v42 }
 0x517   : > { %3141 = vmatmul.mubr.f32.gmra.mrb[38].mxu1 %v7470_v23  ;;  %v7727_v23 = vld [vmem:[%s8307_s5 + $0x90] sm:$0xff]  ;;  %v7778_v40 = vpack.c.bf16 %v3451_v8, %v3444_v35  ;;  %v3492_v52 = vsub.f32 %v7717_v48, %v8395_v43  ;;  %v8394_v8 = vand.u32 4294901760, %v7719_v25  ;;  %v5851_v43 = vld [vmem:[%s6254_s10] sm:$0xff] }
 0x518   : > { %3146 = vmatprep.mubr.f32.mxu1 %v8487_v46  ;;  %5446 = vmatpush1.bf16.msra.mxu1 %v7597_v39  ;;  %v7730_v41 = vand.u32 4294901760, %v7727_v23 }
 0x519   : > { %5437 = vmatprep.subr.bf16.mxu1 %v8482_v50  ;;  %v3493_v35 = vand.u32 4294901760, %v3492_v52 }
 0x51a   : > { %3264 = vmatpush1.msra.mxu0 %v7730_v41 }
 0x51b   : > { %3148 = vmatmul.mubr.f32.gmra.mrb[40].mxu1 %v7482_v36  ;;  %v3408_v36 = vsub.f32 %v7536_v54, %v8407_v21  ;;  %5296 = vmatprep.subr.bf16.mxu0 %v8482_v50  ;;  %v7808_v59 = vpack.c.bf16 %v3493_v35, %v3486_v32 }
 0x51c   : > { %5447 = vmatpush1.bf16.msra.mxu1 %v7685_v10 }
 0x51d   : > { %5438 = vmatprep.subr.bf16.mxu1 %v8482_v50  ;;  %v3409_v1 = vand.u32 4294901760, %v3408_v36  ;;  %v8398_v36 = vand.u32 4294901760, %v7570_v4 }
 0x51f   : > { %v7748_v18 = vpack.c.bf16 %v3409_v1, %v3402_v60  ;;  %v8397_v60 = vand.u32 4294901760, %v7576_v13  ;;  %v7788_v1 = vpack.c.bf16 %v3465_v28, %v3458_v47  ;;  %v3471_v6 = vsub.f32 %v7570_v4, %v8398_v36  ;;  %v5852_v36 = vld [vmem:[%s6254_s10 + $0x8] sm:$0xff] }
 0x520   : > { %5448 = vmatpush1.bf16.msra.mxu1 %v7697_v3  ;;  %v3499_v47 = vsub.f32 %v7719_v25, %v8394_v8  ;;  %v3506_v28 = vsub.f32 %v7721_v49, %v8391_v63 }
 0x521   : > { %5439 = vmatprep.subr.bf16.mxu1 %v8482_v50  ;;  %v3478_v55 = vsub.f32 %v7576_v13, %v8397_v60  ;;  %v3472_v5 = vand.u32 4294901760, %v3471_v6 }
 0x522   : > { %v3500_v6 = vand.u32 4294901760, %v3499_v47 }
 0x523   : > { %v3479_v14 = vand.u32 4294901760, %v3478_v55  ;;  %v3507_v55 = vand.u32 4294901760, %v3506_v28 }
 0x524   : > { %5449 = vmatpush1.bf16.msra.mxu1 %v7709_v9 }
 0x525   : > { %5440 = vmatprep.subr.mxu1 %v8487_v46  ;;  %v7798_v16 = vpack.c.bf16 %v3479_v14, %v3472_v5  ;;  %v8392_v5 = vand.u32 4294901760, %v7743_v58  ;;  %v8393_v14 = vand.u32 4294901760, %v7745_v17  ;;  %v7818_v42 = vpack.c.bf16 %v3507_v55, %v3500_v6 }
 0x527   : > { %v3513_v52 = vsub.f32 %v7743_v58, %v8392_v5  ;;  %v3520_v32 = vsub.f32 %v7745_v17, %v8393_v14  ;;  %v5858_v14 = vld [vmem:[%s6254_s10 + $0x38] sm:$0xff] }
 0x528   : > { %5450 = vmatpush1.msra.mxu1 %v7730_v41 }
 0x529   : > { %v3514_v35 = vand.u32 4294901760, %v3513_v52  ;;  %v3521_v63 = vand.u32 4294901760, %v3520_v32 }
 0x52b   : > { %v7826_v47 = vpack.c.bf16 %v3521_v63, %v3514_v35 }
 0x5d6   : > { %v3107_v8 = vpop.f32.mrb[28].mxu1 }
 0x5d7   : > { %v3154_v2 = vmul.f32 %v5851_v43, %v3107_v8  ;;  %v3109_v60 = vpop.f32.mrb[29].mxu1 }
 0x5d8   : > { %v3155_v22 = vmul.f32 %v5852_v36, %v3109_v60 }
 0x5d9   : > { %v7848_v45 = vand.u32 4294901760, %v3154_v2 }
 0x5da   : > { %v3188_v12 = vsel %vm321_vm0, %v3155_v22, 0  ;;  %v3114_v51 = vpop.f32.mrb[30].mxu1 }
 0x5db   : > { %v7852_v15 = vsub.f32 %v3154_v2, %v7848_v45  ;;  %v7854_v7 = vand.u32 4294901760, %v3188_v12  ;;  %v3156_v0 = vmul.f32 %v5853_v61, %v3114_v51  ;;  %v3116_v21 = vpop.f32.mrb[31].mxu1  ;;  %v5855_v61 = vld [vmem:[%s6254_s10 + $0x20] sm:$0xff] }
 0x5dc   : > { %v3157_v43 = vmul.f32 %v5854_v57, %v3116_v21  ;;  %v5856_v21 = vld [vmem:[%s6254_s10 + $0x28] sm:$0xff] }
 0x5dd   : > { %v8409_v8 = vand.u32 4294901760, %v7852_v15  ;;  %v7860_v36 = vsub.f32 %v3188_v12, %v7854_v7  ;;  %v7862_v60 = vand.u32 4294901760, %v3156_v0 }
 0x5de   : > { %v3191_v22 = vsel %vm321_vm0, %v3157_v43, 0  ;;  %v3121_v35 = vpop.f32.mrb[32].mxu1 }
 0x5df   : > { %v7866_v2 = vsub.f32 %v3156_v0, %v7862_v60  ;;  %v7868_v32 = vand.u32 4294901760, %v3191_v22  ;;  %v3158_v51 = vmul.f32 %v5855_v61, %v3121_v35  ;;  %v3123_v52 = vpop.f32.mrb[33].mxu1  ;;  %v3300_v57 = vsub.f32 %v7852_v15, %v8409_v8 }
 0x5e0   : > { %v3159_v12 = vmul.f32 %v5856_v21, %v3123_v52  ;;  %v8416_v63 = vand.u32 4294901760, %v7860_v36  ;;  %v5857_v21 = vld [vmem:[%s6254_s10 + $0x30] sm:$0xff] }
 0x5e1   : > { %8540 = vst [vmem:[#allocation11_spill] sm:$0xff] %v7866_v2  ;;  %v7877_v43 = vsub.f32 %v3191_v22, %v7868_v32  ;;  %v7879_v0 = vand.u32 4294901760, %v3158_v51  ;;  %v3301_v28 = vand.u32 4294901760, %v3300_v57  ;;  %v8542_v3 = vand.u32 4294901760, %v7866_v2 }
 0x5e2   : > { %v3194_v5 = vsel %vm321_vm0, %v3159_v12, 0  ;;  %v3128_v35 = vpop.f32.mrb[34].mxu1  ;;  %v3294_v61 = vsub.f32 %v7860_v36, %v8416_v63 }
 0x5e3   : > { %v7887_v8 = vsub.f32 %v3158_v51, %v7879_v0  ;;  %v7889_v52 = vand.u32 4294901760, %v3194_v5  ;;  %v3160_v55 = vmul.f32 %v5857_v21, %v3128_v35  ;;  %v3130_v22 = vpop.f32.mrb[35].mxu1  ;;  %v8421_v6 = vand.u32 4294901760, %v7877_v43 }
 0x5e4   : > { %v3161_v9 = vmul.f32 %v5858_v14, %v3130_v22  ;;  %v3295_v12 = vand.u32 4294901760, %v3294_v61  ;;  %v3315_v10 = vsub.f32 %v7866_v2, %v8542_v3  ;;  %v5859_v22 = vld [vmem:[%s6254_s10 + $0x40] sm:$0xff]  ;;  %v5864_v2 = vld [vmem:[%s6254_s10 + $0x68] sm:$0xff] }
 0x5e5   : > { %8541 = vst [vmem:[#allocation12_spill] sm:$0xff] %v7887_v8  ;;  %v7898_v51 = vsub.f32 %v3194_v5, %v7889_v52  ;;  %v7900_v63 = vand.u32 4294901760, %v3160_v55  ;;  %v3309_v35 = vsub.f32 %v7877_v43, %v8421_v6  ;;  %v5860_v6 = vld [vmem:[%s6254_s10 + $0x48] sm:$0xff] }
 0x5e6   : > { %v3197_v57 = vsel %vm321_vm0, %v3161_v9, 0  ;;  %3296 = vmatprep.mubr.f32.mxu0 %v3295_v12  ;;  %v3135_v14 = vpop.f32.mrb[36].mxu1  ;;  %v8545_v9 = vand.u32 4294901760, %v7887_v8 }
 0x5e7   : > { %8543 = vst [vmem:[#allocation13_spill] sm:$0xff] %v7898_v51  ;;  %v7908_v61 = vsub.f32 %v3160_v55, %v7900_v63  ;;  %v7910_v3 = vand.u32 4294901760, %v3197_v57  ;;  %v3162_v5 = vmul.f32 %v5859_v22, %v3135_v14  ;;  %3302 = vmatmul.mubr.f32.vlgmr.msra.gmra.mrb[14].mxu0 %v3301_v28  ;;  %v3137_v39 = vpop.f32.mrb[37].mxu1  ;;  %v3310_v30 = vand.u32 4294901760, %v3309_v35  ;;  %v5861_v22 = vld [vmem:[%s6254_s10 + $0x50] sm:$0xff] }
 0x5e8   : > { %5298 = vmatpush1.bf16.msra.mxu0 %v7748_v18  ;;  %v3163_v31 = vmul.f32 %v5860_v6, %v3137_v39  ;;  %v8430_v21 = vand.u32 4294901760, %v7898_v51  ;;  %v3330_v12 = vsub.f32 %v7887_v8, %v8545_v9  ;;  %v3316_v28 = vand.u32 4294901760, %v3315_v10 }
 0x5e9   : > { %8544 = vst [vmem:[#allocation14_spill] sm:$0xff] %v7908_v61  ;;  %v7920_v55 = vsub.f32 %v3197_v57, %v7910_v3  ;;  %v7922_v44 = vand.u32 4294901760, %v3162_v5  ;;  %3311 = vmatprep.mubr.f32.mxu0 %v3310_v30  ;;  %5299 = vmatprep.subr.bf16.mxu0 %v8482_v50 }
 0x5ea   : > { %v3200_v39 = vsel %vm321_vm0, %v3163_v31, 0  ;;  %v3142_v6 = vpop.f32.mrb[38].mxu1  ;;  %v3324_v35 = vsub.f32 %v7898_v51, %v8430_v21  ;;  %v5862_v31 = vld [vmem:[%s6254_s10 + $0x58] sm:$0xff]  ;;  %v3331_v62 = vand.u32 4294901760, %v3330_v12  ;;  %v8547_v21 = vand.u32 4294901760, %v7908_v61 }
 0x5eb   : > { %8546 = vst [vmem:[#allocation15_spill] sm:$0xff] %v7920_v55  ;;  %v7931_v14 = vsub.f32 %v3162_v5, %v7922_v44  ;;  %v7933_v57 = vand.u32 4294901760, %v3200_v39  ;;  %v3164_v9 = vmul.f32 %v5861_v22, %v3142_v6  ;;  %3317 = vmatmul.mubr.f32.gmra.mrb[16].mxu0 %v3316_v28  ;;  %v3144_v30 = vpop.f32.mrb[39].mxu1  ;;  %v8437_v10 = vand.u32 4294901760, %v7920_v55  ;;  %v5863_v22 = vld [vmem:[%s6254_s10 + $0x60] sm:$0xff]  ;;  %s256_s10 = sand.u32 1, %s5915_s21  }
 0x5ec   : > { %5301 = vmatpush1.bf16.msra.mxu0 %v7758_v56  ;;  %v3165_v18 = vmul.f32 %v5862_v31, %v3144_v30  ;;  %v3325_v8 = vand.u32 4294901760, %v3324_v35  ;;  %v3345_v5 = vsub.f32 %v7908_v61, %v8547_v21  ;;  %s5730_s11 = smul.u32 56, %s256_s10  ;;  %s4253_s21 = ssub.s32 (%p6020_p4), 13, %s6089_s26 }
 0x5ed   : > { %v7943_v51 = vsub.f32 %v3200_v39, %v7933_v57  ;;  %v7945_v6 = vand.u32 4294901760, %v3164_v9  ;;  %5302 = vmatprep.subr.bf16.mxu0 %v8482_v50  ;;  %v3339_v56 = vsub.f32 %v7920_v55, %v8437_v10  ;;  %p4254_p8 = scmp.lt.s32.totalorder (%p6020_p4), %s4253_s21, 7 }
 0x5ee   : > { %v3203_v12 = vsel %vm321_vm0, %v3165_v18, 0  ;;  %3326 = vmatprep.mubr.f32.mxu0 %v3325_v8  ;;  %v3149_v35 = vpop.f32.mrb[40].mxu1  ;;  %v8548_v18 = vand.u32 4294901760, %v7931_v14  ;;  %s8230_s12 = scalar_lea.vmem [#allocation2], %s5730_s11  }
 0x5ef   : > { %v7954_v21 = vsub.f32 %v3164_v9, %v7945_v6  ;;  %v7956_v39 = vand.u32 4294901760, %v3203_v12  ;;  %v3166_v30 = vmul.f32 %v5863_v22, %v3149_v35  ;;  %3332 = vmatmul.mubr.f32.gmra.mrb[18].mxu0 %v3331_v62  ;;  %v3151_v31 = vpop.f32.mrb[41].mxu1  ;;  %v3340_v61 = vand.u32 4294901760, %v3339_v56 }
 0x5f0   : > { %5304 = vmatpush1.bf16.msra.mxu0 %v7768_v19  ;;  %v3167_v10 = vmul.f32 %v5864_v2, %v3151_v31  ;;  %v8445_v28 = vand.u32 4294901760, %v7943_v51  ;;  %v3360_v8 = vsub.f32 %v7931_v14, %v8548_v18  ;;  %v3346_v62 = vand.u32 4294901760, %v3345_v5 }
 0x5f1   : > { %v7966_v9 = vsub.f32 %v3203_v12, %v7956_v39  ;;  %v7968_v55 = vand.u32 4294901760, %v3166_v30  ;;  %3341 = vmatprep.mubr.f32.mxu0 %v3340_v61  ;;  %5305 = vmatprep.subr.bf16.mxu0 %v8482_v50  ;;  %v8443_v56 = vand.u32 4294901760, %v7954_v21 }
 0x5f2   : > { %v3206_v19 = vsel %vm321_vm0, %v3167_v10, 0  ;;  %v3354_v2 = vsub.f32 %v7943_v51, %v8445_v28  ;;  %v3361_v5 = vand.u32 4294901760, %v3360_v8  ;;  %v8576_v28 = vand.u32 4294901760, %v7538_v11 }
 0x5f3   : > { %v7977_v35 = vsub.f32 %v3166_v30, %v7968_v55  ;;  %v7979_v22 = vand.u32 4294901760, %v3206_v19  ;;  %3347 = vmatmul.mubr.f32.gmra.mrb[20].mxu0 %v3346_v62  ;;  %v8444_v12 = vand.u32 4294901760, %v7966_v9  ;;  %v3375_v30 = vsub.f32 %v7954_v21, %v8443_v56 }
 0x5f4   : > { %5307 = vmatpush1.bf16.msra.mxu0 %v7778_v40  ;;  %v3355_v61 = vand.u32 4294901760, %v3354_v2  ;;  %v8573_v56 = vand.u32 4294901760, %v7536_v54 }
 0x5f5   : > { %v7984_v31 = vsub.f32 %v3206_v19, %v7979_v22  ;;  %5308 = vmatprep.subr.bf16.mxu0 %v8482_v50  ;;  %4230 = vmatprep.mubr.f32.mxu1 %v7979_v22  ;;  %v3369_v10 = vsub.f32 %v7966_v9, %v8444_v12  ;;  %v8441_v18 = vand.u32 4294901760, %v7977_v35  ;;  %v3376_v62 = vand.u32 4294901760, %v3375_v30 }
 0x5f6   : > { %3356 = vmatprep.mubr.f32.mxu0 %v3355_v61  ;;  %4232 = vmatmul.mubr.f32.vlgmr.msra.gmra.mrb[42].mxu1 %v7968_v55  ;;  %v8552_v30 = vpack.c.bf16 %v7563_v38, %v7561_v34 }
 0x5f7   : > { %3362 = vmatmul.mubr.f32.gmra.mrb[22].mxu0 %v3361_v5  ;;  %v3370_v40 = vand.u32 4294901760, %v3369_v10  ;;  %v8442_v8 = vand.u32 4294901760, %v7984_v31  ;;  %v3390_v2 = vsub.f32 %v7977_v35, %v8441_v18  ;;  %v8008_v5 = vsub.f32 %v7727_v23, %v7730_v41  ;;  %v8571_v18 = vld [vmem:[#allocation10_spill] sm:$0xff] }
 0x5f8   : > { %5310 = vmatpush1.bf16.msra.mxu0 %v7788_v1 }
 0x5f9   : > { %3371 = vmatprep.mubr.f32.mxu0 %v3370_v40  ;;  %5311 = vmatprep.subr.bf16.mxu0 %v8482_v50  ;;  %v3384_v19 = vsub.f32 %v7984_v31, %v8442_v8  ;;  %v3391_v1 = vand.u32 4294901760, %v3390_v2  ;;  %v8440_v10 = vand.u32 4294901760, %v8008_v5  ;;  %v8553_v40 = vpack.c.bf16 %v7568_v33, %v7565_v27 }
 0x5fa   : > { %v8556_v2 = vpack.c.bf16 %v7721_v49, %v7719_v25  ;;  %v8572_v8 = vand.u32 4294901760, %v7534_v37 }
 0x5fb   : > { %3377 = vmatmul.mubr.f32.gmra.mrb[24].mxu0 %v3376_v62  ;;  %v3385_v61 = vand.u32 4294901760, %v3384_v19  ;;  %v3527_v23 = vsub.f32 %v8008_v5, %v8440_v10  ;;  %v8554_v62 = vpack.c.bf16 %v7576_v13, %v7570_v4  ;;  %v8555_v19 = vpack.c.bf16 %v7717_v48, %v7715_v26  ;;  %v8570_v10 = vld [vmem:[#allocation9_spill] sm:$0xff] }
 0x5fc   : > { %5313 = vmatpush1.bf16.msra.mxu0 %v7798_v16  ;;  %v5378_v12 = vpack.c.bf16 %v8573_v56, %v8572_v8  ;;  %v8588_v8 = vand.u32 4294901760, %v7565_v27  ;;  %v8594_v27 = vand.u32 4294901760, %v7954_v21 }
 0x5fd   : > { %3386 = vmatprep.mubr.f32.mxu0 %v3385_v61  ;;  %5314 = vmatprep.subr.bf16.mxu0 %v8482_v50  ;;  %v3528_v16 = vand.u32 4294901760, %v3527_v23  ;;  %v8557_v61 = vpack.c.bf16 %v7745_v17, %v7743_v58  ;;  %v8559_v23 = vld [vmem:[#allocation13_spill] sm:$0xff] }
 0x5ff   : > { %3392 = vmatmul.mubr.f32.gmra.mrb[26].mxu0 %v3391_v1  ;;  %v8558_v1 = vld [vmem:[#allocation11_spill] sm:$0xff] }
 0x600   : > { %5316 = vmatpush1.bf16.msra.mxu0 %v7808_v59  ;;  %3557 = vmatprep.mubr.f32.mxu0 %v7854_v7  ;;  %v8549_v59 = vpack.c.bf16 %v7536_v54, %v7534_v37  ;;  %v8578_v37 = vand.u32 4294901760, %v8558_v1  ;;  %v8579_v54 = vand.u32 4294901760, %v8559_v23 }
 0x601   : > { %5317 = vmatprep.subr.bf16.mxu0 %v8482_v50 }
 0x604   : > { %5319 = vmatpush1.bf16.msra.mxu0 %v7818_v42  ;;  %v8550_v42 = vpack.c.bf16 %v7549_v29, %v7538_v11 }
 0x605   : > { %5320 = vmatprep.subr.bf16.mxu0 %v8482_v50 }
 0x608   : > { %5322 = vmatpush1.bf16.msra.mxu0 %v7826_v47  ;;  %v8551_v47 = vpack.c.bf16 %v7558_v53, %v7551_v20 }
 0x609   : > { %3523 = vmatprep.subr.mxu0 %v8487_v46 }
 0x60c   : > { %3529 = vmatpush1.msra.mxu0 %v3528_v16  ;;  %v8560_v16 = vld [vmem:[#allocation3_spill] sm:$0xff] }
 0x60d   : > { %3559 = vmatmul.mubr.f32.vlgmr.msra.gmra.mrb[14].mxu0 %v7848_v45  ;;  %5323 = vmatprep.subr.bf16.mxu0 %v8482_v50 }
 0x60e   : > { %3564 = vmatprep.mubr.f32.mxu0 %v7868_v32  ;;  %5325 = vmatpush1.bf16.msra.mxu0 %v8549_v59  ;;  %v8561_v59 = vld [vmem:[#allocation12_spill] sm:$0xff] }
 0x60f   : > { %5326 = vmatprep.subr.bf16.mxu0 %v8482_v50  ;;  %v8582_v11 = vand.u32 4294901760, %v8561_v59 }
 0x611   : > { %3566 = vmatmul.mubr.f32.gmra.mrb[16].mxu0 %v7862_v60 }
 0x612   : > { %3571 = vmatprep.mubr.f32.mxu0 %v7889_v52  ;;  %5328 = vmatpush1.bf16.msra.mxu0 %v8550_v42  ;;  %v8562_v42 = vld [vmem:[#allocation15_spill] sm:$0xff] }
 0x613   : > { %5329 = vmatprep.subr.bf16.mxu0 %v8482_v50 }
 0x615   : > { %3573 = vmatmul.mubr.f32.gmra.mrb[18].mxu0 %v7879_v0 }
 0x616   : > { %3578 = vmatprep.mubr.f32.mxu0 %v7910_v3  ;;  %5331 = vmatpush1.bf16.msra.mxu0 %v8551_v47  ;;  %v8563_v47 = vld [vmem:[#allocation4_spill] sm:$0xff] }
 0x617   : > { %5332 = vmatprep.subr.bf16.mxu0 %v8482_v50 }
 0x619   : > { %3580 = vmatmul.mubr.f32.gmra.mrb[20].mxu0 %v7900_v63 }
 0x61a   : > { %3585 = vmatprep.mubr.f32.mxu0 %v7933_v57  ;;  %5334 = vmatpush1.bf16.msra.mxu0 %v8552_v30  ;;  %v8564_v30 = vld [vmem:[#allocation14_spill] sm:$0xff] }
 0x61b   : > { %5335 = vmatprep.subr.bf16.mxu0 %v8482_v50 }
 0x61d   : > { %3587 = vmatmul.mubr.f32.gmra.mrb[22].mxu0 %v7922_v44 }
 0x61e   : > { %3592 = vmatprep.mubr.f32.mxu0 %v7956_v39  ;;  %5337 = vmatpush1.bf16.msra.mxu0 %v8553_v40  ;;  %v8565_v40 = vld [vmem:[#allocation6_spill] sm:$0xff] }
 0x61f   : > { %5338 = vmatprep.subr.bf16.mxu0 %v8482_v50 }
 0x621   : > { %3594 = vmatmul.mubr.f32.gmra.mrb[24].mxu0 %v7945_v6 }
 0x622   : > { %3599 = vmatprep.mubr.f32.mxu0 %v7979_v22  ;;  %5340 = vmatpush1.bf16.msra.mxu0 %v8554_v62  ;;  %v8566_v62 = vld [vmem:[#allocation7_spill] sm:$0xff] }
 0x623   : > { %5341 = vmatprep.subr.bf16.mxu0 %v8482_v50 }
 0x625   : > { %3601 = vmatmul.mubr.f32.gmra.mrb[26].mxu0 %v7968_v55 }
 0x626   : > { %5343 = vmatpush1.bf16.msra.mxu0 %v8555_v19  ;;  %3710 = vmatprep.mubr.f32.mxu0 %v7860_v36  ;;  %v8567_v19 = vld [vmem:[#allocation5_spill] sm:$0xff] }
 0x627   : > { %5344 = vmatprep.subr.bf16.mxu0 %v8482_v50 }
 0x62a   : > { %5346 = vmatpush1.bf16.msra.mxu0 %v8556_v2  ;;  %v8568_v2 = vld [vmem:[#allocation8_spill] sm:$0xff] }
 0x62b   : > { %5347 = vmatprep.subr.bf16.mxu0 %v8482_v50 }
 0x62e   : > { %5349 = vmatpush1.bf16.msra.mxu0 %v8557_v61  ;;  %v8569_v61 = vand.u32 4294901760, %v7860_v36  ;;  %v8574_v36 = vand.u32 4294901760, %v7852_v15 }
 0x62f   : > { %3678 = vmatprep.subr.mxu0 %v8487_v46 }
 0x632   : > { %3681 = vmatpush1.msra.mxu0 %v8008_v5 }
 0x633   : > { %3713 = vmatmul.mubr.f32.vlgmr.msra.gmra.mrb[14].mxu0 %v7852_v15  ;;  %5350 = vmatprep.subr.bf16.mxu0 %v8482_v50  ;;  %v8580_v15 = vand.u32 4294901760, %v7551_v20  ;;  %v8586_v20 = vand.u32 4294901760, %v8564_v30 }
 0x634   : > { %3719 = vmatprep.mubr.f32.mxu0 %v7877_v43  ;;  %5352 = vmatpush1.bf16.msra.mxu0 %v7532_v24 }
 0x635   : > { %5353 = vmatprep.subr.bf16.mxu0 %v8482_v50 }
 0x637   : > { %3722 = vmatmul.mubr.f32.gmra.mrb[16].mxu0 %v8558_v1 }
 0x638   : > { %3728 = vmatprep.mubr.f32.mxu0 %v8559_v23  ;;  %5355 = vmatpush1.bf16.msra.mxu0 %v8560_v16  ;;  %v8592_v23 = vand.u32 4294901760, %v7570_v4  ;;  %v8598_v4 = vand.u32 4294901760, %v7977_v35 }
 0x639   : > { %5356 = vmatprep.subr.bf16.mxu0 %v8482_v50 }
 0x63b   : > { %3731 = vmatmul.mubr.f32.gmra.mrb[18].mxu0 %v8561_v59 }
 0x63c   : > { %3737 = vmatprep.mubr.f32.mxu0 %v8562_v42  ;;  %5358 = vmatpush1.bf16.msra.mxu0 %v8563_v47 }
 0x63d   : > { %5359 = vmatprep.subr.bf16.mxu0 %v8482_v50 }
 0x63f   : > { %3740 = vmatmul.mubr.f32.gmra.mrb[20].mxu0 %v8564_v30 }
 0x640   : > { %3746 = vmatprep.mubr.f32.mxu0 %v7943_v51  ;;  %5361 = vmatpush1.bf16.msra.mxu0 %v8565_v40 }
 0x641   : > { %5362 = vmatprep.subr.bf16.mxu0 %v8482_v50 }
 0x643   : > { %3749 = vmatmul.mubr.f32.gmra.mrb[22].mxu0 %v7931_v14 }
 0x644   : > { %3755 = vmatprep.mubr.f32.mxu0 %v7966_v9  ;;  %5364 = vmatpush1.bf16.msra.mxu0 %v8566_v62 }
 0x645   : > { %5365 = vmatprep.subr.bf16.mxu0 %v8482_v50 }
 0x647   : > { %3758 = vmatmul.mubr.f32.gmra.mrb[24].mxu0 %v7954_v21  ;;  %v8600_v21 = vand.u32 4294901760, %v7721_v49 }
 0x648   : > { %3764 = vmatprep.mubr.f32.mxu0 %v7984_v31  ;;  %5367 = vmatpush1.bf16.msra.mxu0 %v8567_v19 }
 0x649   : > { %5368 = vmatprep.subr.bf16.mxu0 %v8482_v50 }
 0x64b   : > { %3767 = vmatmul.mubr.f32.gmra.mrb[26].mxu0 %v7977_v35  ;;  %v8603_v35 = vand.u32 4294901760, %v8008_v5 }
 0x64c   : > { %5370 = vmatpush1.bf16.msra.mxu0 %v8568_v2  ;;  %3858 = vmatprep.mubr.f32.mxu0 %v8569_v61  ;;  %v8575_v61 = vand.u32 4294901760, %v7877_v43  ;;  %v8581_v43 = vand.u32 4294901760, %v7558_v53  ;;  %v8587_v53 = vand.u32 4294901760, %v7943_v51  ;;  %v8593_v51 = vand.u32 4294901760, %v7576_v13 }
 0x64d   : > { %5371 = vmatprep.subr.bf16.mxu0 %v8482_v50  ;;  %v8599_v13 = vand.u32 4294901760, %v7719_v25  ;;  %v8605_v25 = vld [vmem:[#allocation10_spill] sm:$0xff] }
 0x64e   : > { %v5384_v56 = vpack.c.bf16 %v8581_v43, %v8580_v15  ;;  %v5393_v59 = vpack.c.bf16 %v8593_v51, %v8592_v23 }
 0x650   : > { %5373 = vmatpush1.bf16.msra.mxu0 %v8570_v10 }
 0x651   : > { %5374 = vmatprep.subr.bf16.mxu0 %v8482_v50 }
 0x654   : > { %5376 = vmatpush1.bf16.msra.mxu0 %v8571_v18  ;;  %v8577_v18 = vand.u32 4294901760, %v7549_v29  ;;  %v8583_v29 = vand.u32 4294901760, %v8562_v42 }
 0x655   : > { %3826 = vmatprep.subr.mxu0 %v8487_v46 }
 0x656   : > { %v5381_v10 = vpack.c.bf16 %v8577_v18, %v8576_v28  ;;  %v8584_v28 = vand.u32 4294901760, %v7561_v34  ;;  %v8590_v34 = vand.u32 4294901760, %v7931_v14  ;;  %v8596_v14 = vand.u32 4294901760, %v7715_v26 }
 0x657   : > { %v8601_v26 = vand.u32 4294901760, %v7743_v58 }
 0x658   : > { %3828 = vmatpush1.msra.mxu0 %v7730_v41 }
 0x659   : > { %3862 = vmatmul.mubr.f32.vlgmr.msra.gmra.mrb[14].mxu0 %v8574_v36  ;;  %5377 = vmatprep.subr.bf16.mxu0 %v8482_v50 }
 0x65a   : > { %3869 = vmatprep.mubr.f32.mxu0 %v8575_v61  ;;  %5379 = vmatpush1.bf16.msra.mxu0 %v5378_v12  ;;  %v8585_v12 = vand.u32 4294901760, %v7563_v38  ;;  %v8591_v38 = vand.u32 4294901760, %v7966_v9  ;;  %v8597_v9 = vand.u32 4294901760, %v7717_v48  ;;  %v8602_v48 = vand.u32 4294901760, %v7745_v17 }
 0x65b   : > { %5380 = vmatprep.subr.bf16.mxu0 %v8482_v50 }
 0x65c   : > { %v5387_v18 = vpack.c.bf16 %v8585_v12, %v8584_v28  ;;  %v5396_v42 = vpack.c.bf16 %v8597_v9, %v8596_v14  ;;  %v5402_v30 = vpack.c.bf16 %v8602_v48, %v8601_v26 }
 0x65d   : > { %3873 = vmatmul.mubr.f32.gmra.mrb[16].mxu0 %v8578_v37 }
 0x65e   : > { %3880 = vmatprep.mubr.f32.mxu0 %v8579_v54  ;;  %5382 = vmatpush1.bf16.msra.mxu0 %v5381_v10  ;;  %v8589_v10 = vand.u32 4294901760, %v7568_v33  ;;  %v8595_v33 = vand.u32 4294901760, %v7984_v31  ;;  %v5399_v31 = vpack.c.bf16 %v8600_v21, %v8599_v13 }
 0x65f   : > { %5383 = vmatprep.subr.bf16.mxu0 %v8482_v50 }
 0x660   : > { %v5390_v1 = vpack.c.bf16 %v8589_v10, %v8588_v8 }
 0x661   : > { %3884 = vmatmul.mubr.f32.gmra.mrb[18].mxu0 %v8582_v11 }
 0x662   : > { %3891 = vmatprep.mubr.f32.mxu0 %v8583_v29  ;;  %5385 = vmatpush1.bf16.msra.mxu0 %v5384_v56 }
 0x663   : > { %5386 = vmatprep.subr.bf16.mxu0 %v8482_v50 }
 0x665   : > { %3895 = vmatmul.mubr.f32.gmra.mrb[20].mxu0 %v8586_v20 }
 0x666   : > { %3902 = vmatprep.mubr.f32.mxu0 %v8587_v53  ;;  %5388 = vmatpush1.bf16.msra.mxu0 %v5387_v18 }
 0x667   : > { %5389 = vmatprep.subr.bf16.mxu0 %v8482_v50 }
 0x669   : > { %3906 = vmatmul.mubr.f32.gmra.mrb[22].mxu0 %v8590_v34 }
 0x66a   : > { %3913 = vmatprep.mubr.f32.mxu0 %v8591_v38  ;;  %5391 = vmatpush1.bf16.msra.mxu0 %v5390_v1 }
 0x66b   : > { %5392 = vmatprep.subr.bf16.mxu0 %v8482_v50 }
 0x66d   : > { %3917 = vmatmul.mubr.f32.gmra.mrb[24].mxu0 %v8594_v27 }
 0x66e   : > { %3924 = vmatprep.mubr.f32.mxu0 %v8595_v33  ;;  %5394 = vmatpush1.bf16.msra.mxu0 %v5393_v59 }
 0x66f   : > { %5395 = vmatprep.subr.bf16.mxu0 %v8482_v50 }
 0x671   : > { %3928 = vmatmul.mubr.f32.gmra.mrb[26].mxu0 %v8598_v4 }
 0x672   : > { %5397 = vmatpush1.bf16.msra.mxu0 %v5396_v42  ;;  %4055 = vmatprep.mubr.f32.mxu0 %v7854_v7 }
 0x673   : > { %5398 = vmatprep.subr.bf16.mxu0 %v8482_v50 }
 0x676   : > { %5400 = vmatpush1.bf16.msra.mxu0 %v5399_v31 }
 0x677   : > { %5401 = vmatprep.subr.bf16.mxu0 %v8482_v50 }
 0x67a   : > { %5403 = vmatpush1.bf16.msra.mxu0 %v5402_v30 }
 0x67b   : > { %4023 = vmatprep.subr.mxu0 %v8487_v46 }
 0x67e   : > { %4027 = vmatpush1.msra.mxu0 %v8603_v35 }
 0x67f   : > { %4057 = vmatmul.mubr.f32.vlgmr.msra.gmra.mrb[14].mxu0 %v7848_v45  ;;  %5404 = vmatprep.subr.bf16.mxu0 %v8482_v50 }
 0x680   : > { %4062 = vmatprep.mubr.f32.mxu0 %v7868_v32  ;;  %5406 = vmatpush1.bf16.msra.mxu0 %v7532_v24  ;;  %v8604_v24 = vld [vmem:[#allocation9_spill] sm:$0xff] }
 0x681   : > { %5407 = vmatprep.subr.bf16.mxu0 %v8482_v50 }
 0x683   : > { %4064 = vmatmul.mubr.f32.gmra.mrb[16].mxu0 %v7862_v60 }
 0x684   : > { %4069 = vmatprep.mubr.f32.mxu0 %v7889_v52  ;;  %5409 = vmatpush1.bf16.msra.mxu0 %v8560_v16 }
 0x685   : > { %5410 = vmatprep.subr.bf16.mxu0 %v8482_v50 }
 0x687   : > { %4071 = vmatmul.mubr.f32.gmra.mrb[18].mxu0 %v7879_v0 }
 0x688   : > { %4076 = vmatprep.mubr.f32.mxu0 %v7910_v3  ;;  %5412 = vmatpush1.bf16.msra.mxu0 %v8563_v47 }
 0x689   : > { %5413 = vmatprep.subr.bf16.mxu0 %v8482_v50 }
 0x68b   : > { %4078 = vmatmul.mubr.f32.gmra.mrb[20].mxu0 %v7900_v63 }
 0x68c   : > { %4083 = vmatprep.mubr.f32.mxu0 %v7933_v57  ;;  %5415 = vmatpush1.bf16.msra.mxu0 %v8565_v40 }
 0x68d   : > { %5416 = vmatprep.subr.bf16.mxu0 %v8482_v50 }
 0x68f   : > { %4085 = vmatmul.mubr.f32.gmra.mrb[22].mxu0 %v7922_v44 }
 0x690   : > { %4090 = vmatprep.mubr.f32.mxu0 %v7956_v39  ;;  %5418 = vmatpush1.bf16.msra.mxu0 %v8566_v62 }
 0x691   : > { %5419 = vmatprep.subr.bf16.mxu0 %v8482_v50 }
 0x693   : > { %4092 = vmatmul.mubr.f32.gmra.mrb[24].mxu0 %v7945_v6 }
 0x694   : > { %4097 = vmatprep.mubr.f32.mxu0 %v7979_v22  ;;  %5421 = vmatpush1.bf16.msra.mxu0 %v8567_v19 }
 0x695   : > { %5422 = vmatprep.subr.bf16.mxu0 %v8482_v50 }
 0x697   : > { %4099 = vmatmul.mubr.f32.gmra.mrb[26].mxu0 %v7968_v55 }
 0x698   : > { %5424 = vmatpush1.bf16.msra.mxu0 %v8568_v2  ;;  %4188 = vmatprep.mubr.f32.mxu0 %v7854_v7 }
 0x699   : > { %5425 = vmatprep.subr.bf16.mxu0 %v8482_v50 }
 0x69c   : > { %5427 = vmatpush1.bf16.msra.mxu0 %v8604_v24 }
 0x69d   : > { %5428 = vmatprep.subr.bf16.mxu0 %v8482_v50 }
 0x6a0   : > { %5430 = vmatpush1.bf16.msra.mxu0 %v8605_v25 }
 0x6a1   : > { %4158 = vmatprep.subr.mxu0 %v8487_v46 }
 0x6a4   : > { %4160 = vmatpush1.msra.mxu0 %v7730_v41 }
 0x6a5   : > { %4190 = vmatmul.mubr.f32.vlgmr.msra.gmra.mrb[14].mxu0 %v7848_v45 }
 0x6a6   : > { %4195 = vmatprep.mubr.f32.mxu0 %v7868_v32 }
 0x6a9   : > { %4197 = vmatmul.mubr.f32.gmra.mrb[16].mxu0 %v7862_v60 }
 0x6aa   : > { %4202 = vmatprep.mubr.f32.mxu0 %v7889_v52 }
 0x6ad   : > { %4204 = vmatmul.mubr.f32.gmra.mrb[18].mxu0 %v7879_v0 }
 0x6ae   : > { %4209 = vmatprep.mubr.f32.mxu0 %v7910_v3 }
 0x6b1   : > { %4211 = vmatmul.mubr.f32.gmra.mrb[20].mxu0 %v7900_v63 }
 0x6b2   : > { %4216 = vmatprep.mubr.f32.mxu0 %v7933_v57 }
 0x6b5   : > { %4218 = vmatmul.mubr.f32.gmra.mrb[22].mxu0 %v7922_v44 }
 0x6b6   : > { %4223 = vmatprep.mubr.f32.mxu0 %v7956_v39 }
 0x6b9   : > { %4225 = vmatmul.mubr.f32.gmra.mrb[24].mxu0 %v7945_v6 }
 0x6c9   : > { %v4233_v50 = vpop.f32.mrb[42].mxu1 }
 0x6ca   : > { %v4235_v46 = vpop.f32.mrb[43].mxu1 }
 0x76a   : > { %v4100_v49 = vpop.f32.mrb[26].mxu0 }
 0x76b   : > { %v5465_v41 = vadd.f32 %v4233_v50, %v4100_v49  ;;  %v4102_v58 = vpop.f32.mrb[27].mxu0 }
 0x76d   : > { %4244 = vst.msk [vmem:[%s8230_s12 + $0x30] sm:$0xff] %vm4237_vm3, %v5465_v41 }
 0x778   : > { %v4191_v44 = vpop.f32.mrb[14].mxu0 }
 0x779   : > { %4238 = vst.msk [vmem:[%s8230_s12] sm:$0xff] %vm4237_vm3, %v4191_v44  ;;  %v4193_v17 = vpop.f32.mrb[15].mxu0 }
 0x77c   : > { %v4198_v7 = vpop.f32.mrb[16].mxu0 }
 0x77d   : > { %4239 = vst.msk [vmem:[%s8230_s12 + $0x8] sm:$0xff] %vm4237_vm3, %v4198_v7  ;;  %v4200_v45 = vpop.f32.mrb[17].mxu0 }
 0x780   : > { %v4205_v63 = vpop.f32.mrb[18].mxu0 }
 0x781   : > { %4240 = vst.msk [vmem:[%s8230_s12 + $0x10] sm:$0xff] %vm4237_vm3, %v4205_v63  ;;  %v4207_v32 = vpop.f32.mrb[19].mxu0 }
 0x784   : > { %v4212_v60 = vpop.f32.mrb[20].mxu0 }
 0x785   : > { %4241 = vst.msk [vmem:[%s8230_s12 + $0x18] sm:$0xff] %vm4237_vm3, %v4212_v60  ;;  %v4214_v0 = vpop.f32.mrb[21].mxu0 }
 0x787   : > { %4251 = sbr.rel (!%p6020_p4) target bundleno = 1995 (0x7cb), region = 48 }
 0x788   : > { %v4219_v52 = vpop.f32.mrb[22].mxu0 }
 0x789   : > { %4242 = vst.msk [vmem:[%s8230_s12 + $0x20] sm:$0xff] %vm4237_vm3, %v4219_v52  ;;  %v4221_v3 = vpop.f32.mrb[23].mxu0 }
 0x78c   : > { %v4226_v55 = vpop.f32.mrb[24].mxu0 }
 0x78d   : > { %4243 = vst.msk [vmem:[%s8230_s12 + $0x28] sm:$0xff] %vm4237_vm3, %v4226_v55  ;;  %v4228_v57 = vpop.f32.mrb[25].mxu0 }
 0x78e   : > { %s8613_s21 = smov (!%p4254_p8, %s4253_s21), 7 }
 0x78f   : > { %s4493_s17 = sshll.u32 %s8613_s21, 7 }
 0x790   : > { %p4496_p9 = scmp.eq.s32.totalorder %s4493_s17, 0 }
 0x791   : > { %5865 = sdivrem.u32 (!%p4496_p9), %s8613_s21, 7 }
 0x792   : > { %4262 = sbr.rel (%p4496_p9) target bundleno = 1995 (0x7cb), region = 52 }
 0x79a   : > { %s8259_s29 = spop.drf %5865 }
 0x79b   : > { %p4497_p10 = scmp.le.s32.totalorder %s8259_s29, 0 }
 0x79c   : > { %s8606_s24 = smov (!%p4497_p10), %s8253_s16  ;;  %s8607_s26 = smov (!%p4497_p10), %s8230_s12 }
 0x79d   : > { %4442 = sbr.rel (%p4497_p10) target bundleno = 1966 (0x7ae), region = 128  ;;  %s8268_s18 = smov (!%p4497_p10), 0  }
 0x79e   : > { %s8270_s19 = smov (!%p4497_p10), 0  }
 0x7a4 LB: >> { %v4338_v6 = vld [vmem:[%s5931_s26] sm:$0xff]  ;;  %v4340_v39 = vld [vmem:[%s5931_s26 + $0x8] sm:$0xff]  ;;  %v4342_v22 = vld [vmem:[%s5931_s26 + $0x10] sm:$0xff]  ;;  %s4352_s20 = sadd.s32 1, %s5935_s18  ;;  %s4332_s19 = sadd.s32 1, %s5939_s19   ;;  %s5939_s19 = sphi %s8270_s19, %s4332_s19   ;;  %s5935_s18 = sphi %s8268_s18, %s8608_s18   ;;  %s5931_s26 = sphi %s8607_s26, %s4357_s26   ;;  %s5927_s24 = sphi %s8606_s24, %s4358_s24  }
 0x7a5   : >> { %4339 = vst [vmem:[%s5927_s24] sm:$0xff] %v4338_v6  ;;  %4341 = vst [vmem:[%s5927_s24 + $0x8] sm:$0xff] %v4340_v39  ;;  %v4344_v5 = vld [vmem:[%s5931_s26 + $0x18] sm:$0xff]  ;;  %v4346_v16 = vld [vmem:[%s5931_s26 + $0x20] sm:$0xff]  ;;  %p4353_p11 = scmp.ge.s32.totalorder %s4352_s20, %s8259_s29  ;;  %p4331_p12 = scmp.ge.s32.totalorder %s4332_s19, %s8259_s29 }
 0x7a6   : >> { %4343 = vst [vmem:[%s5927_s24 + $0x10] sm:$0xff] %v4342_v22  ;;  %v4348_v47 = vld [vmem:[%s5931_s26 + $0x28] sm:$0xff]  ;;  %4345 = vst [vmem:[%s5927_s24 + $0x18] sm:$0xff] %v4344_v5  ;;  %v4350_v40 = vld [vmem:[%s5931_s26 + $0x30] sm:$0xff] }
 0x7a7   : >> { %4347 = vst [vmem:[%s5927_s24 + $0x20] sm:$0xff] %v4346_v16  ;;  %4349 = vst [vmem:[%s5927_s24 + $0x28] sm:$0xff] %v4348_v47  ;;  %s8615_s20 = smov (%p4353_p11, %s4352_s20), 0  ;;  %4334 = sbr.rel (!%p4331_p12) target bundleno = 1956 (0x7a4), region = 134 }
 0x7a8   : >> { %4351 = vst [vmem:[%s5927_s24 + $0x30] sm:$0xff] %v4350_v40  ;;  %s4355_s23 = smul.u32 56, %s8615_s20  ;;  %s8608_s18 = smov %s8615_s20 }
 0x7aa   : >> { %s4357_s26 = scalar_lea.vmem %s8230_s12, %s4355_s23 [#allocation2]   ;;  %s4358_s24 = scalar_lea.vmem %s8253_s16, %s4355_s23  }
 0x7ae PF: > { %5867 = sdivrem.u32 %s8613_s21, 7 }
 0x7af   : > { %s4498_s27 = smul.u32 56, %s8259_s29 }
 0x7b1   : > { %s4363_s30 = scalar_lea.vmem %s8230_s12, %s4498_s27 [#allocation2]   ;;  %s4365_s7 = scalar_lea.vmem %s8253_s16, %s4498_s27  }
 0x7b7   : > { %s5868_s8 = spop.drf %5867 }
 0x7b8   : > { %p4500_p13 = scmp.le.s32.totalorder %s5868_s8, 0 }
 0x7b9   : > { %s5941_s9 = smov (!%p4500_p13), %s4365_s7   ;;  %s5945_s10 = smov (!%p4500_p13), %s4363_s30  }
 0x7ba   : > { %4456 = sbr.rel (%p4500_p13) target bundleno = 1995 (0x7cb), region = 139  ;;  %s5949_s11 = smov (!%p4500_p13), 0  }
 0x7bb   : > { %s5953_s13 = smov (!%p4500_p13), 0  }
 0x7c1 LB: >> { %v4375_v62 = vld [vmem:[%s5947_s10] sm:$0xff]  ;;  %s4377_s14 = sadd.s32 1, %s5951_s11  ;;  %s4369_s13 = sadd.s32 1, %s5955_s13   ;;  %s5955_s13 = sphi %s5953_s13, %s4369_s13   ;;  %s5951_s11 = sphi %s5949_s11, %s5950_s11   ;;  %s5947_s10 = sphi %s5945_s10, %s4382_s10   ;;  %s5943_s9 = sphi %s5941_s9, %s4383_s9  }
 0x7c2   : >> { %4376 = vst [vmem:[%s5943_s9] sm:$0xff] %v4375_v62  ;;  %p4378_p0 = scmp.ge.s32.totalorder %s4377_s14, %s5868_s8  ;;  %p4368_p1 = scmp.ge.s32.totalorder %s4369_s13, %s5868_s8 }
 0x7c4   : >> { %s8617_s14 = smov (%p4378_p0, %s4377_s14), 0  ;;  %4371 = sbr.rel (!%p4368_p1) target bundleno = 1985 (0x7c1), region = 145 }
 0x7c5   : >> { %s4501_s12 = sshll.u32 %s8617_s14, 3  ;;  %s5950_s11 = smov %s8617_s14  }
 0x7c6   : >> { %s4382_s10 = scalar_lea.vmem %s4363_s30, %s4501_s12 [#allocation2]   ;;  %s4383_s9 = scalar_lea.vmem %s4365_s7, %s4501_s12  }
 0x7cb PF: > { %p13_p2 = scmp.ge.s32.totalorder %s6010_s25, 4   ;;  %s8609_s21 = smov %s5919_s22 }
 0x7cc   : > { %s8610_s22 = smov %s6018_s28  ;;  %s8611_s23 = smov %s6010_s25 }
 0x7cd   :  { %15 = sbr.rel (!%p13_p2) target bundleno = 2 (0x2), region = 156 }

</bundles_post_ra>
